<compile_context>
chip_gen: v5e
topology: v5e:2x2
jax: 0.10.0
libtpu: 0.0.40
codegen_flags: <defaults>
</compile_context>

<pallas_src>
import functools

import jax
import jax.numpy as jnp
import numpy as np
from jax import lax
from jax.experimental import pallas as pl
from jax.experimental.pallas import tpu as pltpu

SOS_TOKEN = 0
EOS_TOKEN = 1


def vae_forward_kernel(
    # ---- inputs (packed) ----
    tok_ref,        # (L, 2) int32 : col0 = encoder tokens, col1 = shifted decoder tokens
    nar_ref,        # (Rn, Wn) f32 : narrow pack (see wrapper for row layout)
    wide_ref,       # (4H+2, 4H) f32 : enc_wih|enc_whh|dec_wih|dec_whh|enc_b|dec_b
    # ---- outputs ----
    pred_ref,       # (L, 1) int32
    dist_ref,       # (L, V) f32
    ml_ref,         # (1, 2Z) f32  fused mean|logvar
    # ---- scratch ----
    h_acc_ref,      # (L, H) f32  decoder hidden states (teacher forcing)
    logits_acc_ref, # (L, V) f32  decoder logits (greedy)
    *, H, V, Z, C, use_teacher_forcing,
):
    L = dist_ref.shape[0]
    f32 = jnp.float32
    H4 = 4 * H

    # ------------------ unpack wide block (sublane-aligned rows) -------------
    enc_wih = wide_ref[0:H, :]
    enc_whh = wide_ref[H:2 * H, :]
    dec_wih = wide_ref[2 * H:3 * H, :]
    dec_whh = wide_ref[3 * H:4 * H, :]
    enc_b = wide_ref[4 * H:4 * H + 1, :]
    dec_b = wide_ref[4 * H + 1:4 * H + 2, :]

    # ------------------ unpack narrow block (static row slices) --------------
    r = 0
    enc_emb = nar_ref[r:r + V, 0:H]; r += V          # (V,H)
    dec_emb = nar_ref[r:r + V, 0:H]; r += V          # (V,H)
    w_ml = nar_ref[r:r + H, 0:2 * Z]; r += H         # (H,2Z)
    wout = nar_ref[r:r + H, 0:V]; r += H             # (H,V)
    wlc_z = nar_ref[r:r + Z, 0:H]; r += Z            # (Z,H)
    wlc_c = nar_ref[r:r + C, 0:H]; r += C            # (C,H)
    blc = nar_ref[r:r + 1, 0:H]; r += 1              # (1,H)
    b_ml = nar_ref[r:r + 1, 0:2 * Z]; r += 1         # (1,2Z)
    bout = nar_ref[r:r + 1, 0:V]; r += 1             # (1,V)
    h0 = nar_ref[r:r + 1, 0:H]; r += 1               # (1,H)
    c0 = nar_ref[r:r + 1, 0:H]; r += 1               # (1,H)
    cond = nar_ref[r:r + 1, 0:C]; r += 1             # (1,C)
    eps = nar_ref[r:r + 1, 0:Z]; r += 1              # (1,Z)

    iota_LV = lax.broadcasted_iota(jnp.int32, (L, V), 1)

    # Hoisted lane masks: sigmoid(x) = 0.5*tanh(0.5x) + 0.5 on i/f/o lanes,
    # plain tanh on the g lanes -> single full-row EUP tanh per LSTM step.
    lane4 = lax.broadcasted_iota(jnp.int32, (1, H4), 1)
    is_g = (lane4 >= 2 * H) & (lane4 < 3 * H)
    gate_scale = jnp.where(is_g, 1.0, 0.5).astype(f32)   # pre- and post-scale
    gate_shift = jnp.where(is_g, 0.0, 0.5).astype(f32)

    def lstm_step(gates_lin, h, c):
        # Whole-row nonlinearity (2 EUP pushes/step total incl. tanh(c)).
        act = jnp.tanh(gates_lin * gate_scale) * gate_scale + gate_shift
        i = act[:, 0:H]
        f = act[:, H:2 * H]
        g = act[:, 2 * H:3 * H]
        o = act[:, 3 * H:H4]
        c_new = f * c + i * g
        h_new = o * jnp.tanh(c_new)
        return h_new, c_new

    # ------------------------------ Encoder ----------------------------------
    # Hoisted: batched embedding lookup + input projection (off the chain).
    enc_oh = (iota_LV == tok_ref[:, 0:1]).astype(f32)                         # (L,V)
    enc_x = jnp.dot(enc_oh, enc_emb, preferred_element_type=f32)              # (L,H)
    enc_xi = jnp.dot(enc_x, enc_wih, preferred_element_type=f32) + enc_b      # (L,4H)

    h = h0
    c = c0
    for t in range(L):  # fully unrolled; only h @ W_hh is serial per step
        gates = enc_xi[t:t + 1, :] + jnp.dot(h, enc_whh, preferred_element_type=f32)
        h, c = lstm_step(gates, h, c)

    # --------------- fused mean/logvar + reparameterization ------------------
    ml = jnp.dot(h, w_ml, preferred_element_type=f32) + b_ml                  # (1,2Z)
    ml_ref[...] = ml
    mean = ml[:, 0:Z]
    logvar = ml[:, Z:2 * Z]
    latent = mean + eps * jnp.exp(0.5 * logvar)

    # latentcondition2hidden(cat(latent, c)) as a split contraction.
    dec_h = (jnp.dot(latent, wlc_z, preferred_element_type=f32)
             + jnp.dot(cond, wlc_c, preferred_element_type=f32)
             + blc)
    dec_c = jnp.zeros_like(dec_h)

    # ------------------------------ Decoder ----------------------------------
    # relu(onehot @ E) == onehot @ relu(E): fold embed + ReLU + input proj
    # into one precomputed (V,4H) table.
    emb_proj = jnp.dot(jnp.maximum(dec_emb, 0.0), dec_wih,
                       preferred_element_type=f32)

    h = dec_h
    c = dec_c

    if use_teacher_forcing:
        # Inputs known up front: one batched (L,V)@(V,4H) matmul.
        dec_oh = (iota_LV == tok_ref[:, 1:2]).astype(f32)                     # (L,V)
        dec_xi = jnp.dot(dec_oh, emb_proj, preferred_element_type=f32) + dec_b
        for di in range(L):
            gates = dec_xi[di:di + 1, :] + jnp.dot(h, dec_whh,
                                                   preferred_element_type=f32)
            h, c = lstm_step(gates, h, c)
            h_acc_ref[di:di + 1, :] = h        # off-chain scratch row store
        # Batched output projection after the loop.
        logits = jnp.dot(h_acc_ref[...], wout, preferred_element_type=f32) + bout
    else:
        # Greedy feedback: argmax must stay in-loop; log-softmax + output
        # stores still happen once after the loop.
        iota_1V = lax.broadcasted_iota(jnp.int32, (1, V), 1)
        x_oh = (iota_1V == SOS_TOKEN).astype(f32)
        for di in range(L):
            gates = (jnp.dot(x_oh, emb_proj, preferred_element_type=f32)
                     + jnp.dot(h, dec_whh, preferred_element_type=f32)
                     + dec_b)
            h, c = lstm_step(gates, h, c)
            step_logits = jnp.dot(h, wout, preferred_element_type=f32) + bout  # (1,V)
            logits_acc_ref[di:di + 1, :] = step_logits
            mx = jnp.max(step_logits, axis=1, keepdims=True)
            pred_idx = jnp.min(jnp.where(step_logits == mx, iota_1V, V),
                               axis=1, keepdims=True)                          # (1,1)
            x_oh = (iota_1V == pred_idx).astype(f32)
            # TODO(synk): PyTorch breaks out of this loop on EOS (data-
            # dependent trip count); here the greedy loop always runs L steps.
        logits = logits_acc_ref[...]

    # ------------- post-loop: log-softmax, argmax, single stores -------------
    mx = jnp.max(logits, axis=1, keepdims=True)
    logp = logits - mx - jnp.log(jnp.sum(jnp.exp(logits - mx),
                                         axis=1, keepdims=True))
    dist_ref[...] = logp
    pred = jnp.min(jnp.where(logits == mx, iota_LV, V), axis=1, keepdims=True)
    pred_ref[...] = pred.astype(jnp.int32)


@functools.partial(jax.jit, static_argnames=("use_teacher_forcing",))
def vae_forward(tokens, h0, c0, cond, eps, params, *, use_teacher_forcing=True):
    """Wrapper: packs params into 3 DMAs, one pallas_call with grid=()."""
    L = tokens.shape[0]
    V, H = params["enc_emb"].shape
    Z = params["w_mean"].shape[1]
    C = params["w_lc_c"].shape[0]

    enc_tok = tokens.reshape(L, 1).astype(jnp.int32)
    # Teacher-forcing decoder inputs: SOS then tokens[:-1].
    dec_tok = jnp.concatenate(
        [jnp.full((1, 1), SOS_TOKEN, jnp.int32), enc_tok[:L - 1]], axis=0)
    tok = jnp.concatenate([enc_tok, dec_tok], axis=1)            # (L, 2)

    # Fuse hidden->mean and hidden->logvar into one projection.
    w_ml = jnp.concatenate([params["w_mean"], params["w_logvar"]], axis=1)
    b_ml = jnp.concatenate([params["b_mean"], params["b_logvar"]], axis=1)

    # Narrow pack: everything H/V/2Z/C/Z lanes wide, padded to Wn lanes,
    # stacked along rows (order must match kernel unpacking).
    Wn = max(H, 2 * Z, V, C, Z)

    def padw(x):
        return jnp.pad(x.astype(jnp.float32), ((0, 0), (0, Wn - x.shape[1])))

    narrow = jnp.concatenate([
        padw(params["enc_emb"]), padw(params["dec_emb"]),
        padw(w_ml), padw(params["w_out"]),
        padw(params["w_lc_z"]), padw(params["w_lc_c"]),
        padw(params["b_lc"]), padw(b_ml), padw(params["b_out"]),
        padw(h0), padw(c0), padw(cond), padw(eps),
    ], axis=0)                                                   # (Rn, Wn)

    # Wide pack: the four LSTM weight matrices + their biases, all 4H lanes.
    wide = jnp.concatenate([
        params["enc_wih"], params["enc_whh"],
        params["dec_wih"], params["dec_whh"],
        params["enc_b"], params["dec_b"],
    ], axis=0).astype(jnp.float32)                               # (4H+2, 4H)

    kernel = functools.partial(
        vae_forward_kernel, H=H, V=V, Z=Z, C=C,
        use_teacher_forcing=use_teacher_forcing)

    vmem = pl.BlockSpec(memory_space=pltpu.MemorySpace.VMEM)

    out_shape = (
        jax.ShapeDtypeStruct((L, 1), jnp.int32),      # predict_output
        jax.ShapeDtypeStruct((L, V), jnp.float32),    # predict_distribution
        jax.ShapeDtypeStruct((1, 2 * Z), jnp.float32),  # fused mean|logvar
    )

    pred, dist, ml = pl.pallas_call(
        kernel,
        out_shape=out_shape,
        in_specs=[vmem, vmem, vmem],
        out_specs=(vmem, vmem, vmem),
        scratch_shapes=[
            pltpu.VMEM((L, H), jnp.float32),   # decoder hidden states (TF)
            pltpu.VMEM((L, V), jnp.float32),   # decoder logits (greedy)
        ],
    )(tok, narrow, wide)

    # PyTorch returns hidden-shaped (1,1,latent) mean / logvar.
    mean = ml[:, :Z].reshape(1, 1, Z)
    logvar = ml[:, Z:].reshape(1, 1, Z)
    return pred, dist, mean, logvar


# ------------------------ pure-JAX reference (for checking) ------------------
def vae_forward_ref(tokens, h0, c0, cond, eps, params, use_teacher_forcing=True):
    def lstm(x, h, c, wih, whh, b):
        H = h.shape[-1]
        gates = x @ wih + h @ whh + b
        i = jax.nn.sigmoid(gates[:, :H])
        f = jax.nn.sigmoid(gates[:, H:2 * H])
        g = jnp.tanh(gates[:, 2 * H:3 * H])
        o = jax.nn.sigmoid(gates[:, 3 * H:])
        c = f * c + i * g
        return o * jnp.tanh(c), c

    h, c = h0, c0
    L = tokens.shape[0]
    for t in range(L):
        x = params["enc_emb"][int(tokens[t])][None, :]
        h, c = lstm(x, h, c, params["enc_wih"], params["enc_whh"], params["enc_b"])
    mean = h @ params["w_mean"] + params["b_mean"]
    logvar = h @ params["w_logvar"] + params["b_logvar"]
    latent = mean + eps * jnp.exp(0.5 * logvar)
    dh = (latent @ params["w_lc_z"] + cond @ params["w_lc_c"] + params["b_lc"])
    dc = jnp.zeros_like(dh)

    tok = SOS_TOKEN
    dists, preds = [], []
    for di in range(L):
        x = jax.nn.relu(params["dec_emb"][tok][None, :])
        dh, dc = lstm(x, dh, dc, params["dec_wih"], params["dec_whh"], params["dec_b"])
        logits = dh @ params["w_out"] + params["b_out"]
        dists.append(jax.nn.log_softmax(logits, axis=1))
        pred = int(jnp.argmax(logits, axis=1)[0])
        preds.append(pred)
        tok = int(tokens[di]) if use_teacher_forcing else pred
    return (jnp.array(preds, jnp.int32), jnp.concatenate(dists, 0),
            mean.reshape(1, 1, -1), logvar.reshape(1, 1, -1))


def make_params(key, V, H, Z, C):
    ks = iter(jax.random.split(key, 24))

    def rnd(shape, scale):
        return (scale * jax.random.normal(next(ks), shape)).astype(jnp.float32)

    sH = 1.0 / np.sqrt(H)
    p = {
        "enc_emb": rnd((V, H), 0.3),
        "enc_wih": rnd((H, 4 * H), sH),
        "enc_whh": rnd((H, 4 * H), sH),
        "enc_b": rnd((1, 4 * H), sH),
        "w_mean": rnd((H, Z), sH),
        "b_mean": rnd((1, Z), sH),
        "w_logvar": rnd((H, Z), sH),
        "b_logvar": rnd((1, Z), sH),
        "w_lc_z": rnd((Z, H), 1.0 / np.sqrt(Z + C)),
        "w_lc_c": rnd((C, H), 1.0 / np.sqrt(Z + C)),
        "b_lc": rnd((1, H), 1.0 / np.sqrt(Z + C)),
        "dec_emb": rnd((V, H), 0.3),
        "dec_wih": rnd((H, 4 * H), sH),
        "dec_whh": rnd((H, 4 * H), sH),
        "dec_b": rnd((1, 4 * H), sH),
        "w_out": rnd((H, V), sH),
        "b_out": rnd((1, V), sH),
        "tense_emb": rnd((4, C), 0.3),
    }
    return p


if __name__ == "__main__":
    # Small, module-consistent sizes: vocab=32, hidden=32, latent=16, cond=8, seq=8
    V, H, Z, C, L = 32, 32, 16, 8, 8

    key = jax.random.PRNGKey(0)
    kp, kt, ke = jax.random.split(key, 3)
    params = make_params(kp, V, H, Z, C)

    tokens = jax.random.randint(kt, (L,), 2, V, dtype=jnp.int32)
    h0 = jnp.zeros((1, H), jnp.float32)        # encoder.init_h0
    c0 = jnp.zeros((1, H), jnp.float32)        # encoder.init_c0
    cond = params["tense_emb"][1][None, :]     # tense_embedding(tense=1).view(1,1,-1)
    eps = jax.random.normal(ke, (1, Z), jnp.float32)   # reparameterize noise

    for tf in (True, False):
        pred, dist, mean, logvar = vae_forward(
            tokens, h0, c0, cond, eps, params, use_teacher_forcing=tf)
        jax.block_until_ready((pred, dist, mean, logvar))

        pred_r, dist_r, mean_r, logvar_r = vae_forward_ref(
            tokens, h0, c0, cond, eps, params, use_teacher_forcing=tf)
        np.testing.assert_allclose(np.asarray(dist), np.asarray(dist_r),
                                   rtol=2e-3, atol=2e-3)
        np.testing.assert_allclose(np.asarray(mean), np.asarray(mean_r),
                                   rtol=2e-3, atol=2e-3)
        np.testing.assert_allclose(np.asarray(logvar), np.asarray(logvar_r),
                                   rtol=2e-3, atol=2e-3)
        np.testing.assert_array_equal(np.asarray(pred).reshape(-1),
                                      np.asarray(pred_r).reshape(-1))

    print("KERNEL_OK")
</pallas_src>

<mosaic_0001>
module attributes {stable_mosaic.version = 11 : i64} {
  func.func @vae_forward_kernel(%arg0: memref<8x2xi32, #tpu.memory_space<vmem>>, %arg1: memref<159x32xf32, #tpu.memory_space<vmem>>, %arg2: memref<130x128xf32, #tpu.memory_space<vmem>>, %arg3: memref<8x1xi32, #tpu.memory_space<vmem>>, %arg4: memref<8x32xf32, #tpu.memory_space<vmem>>, %arg5: memref<1x32xf32, #tpu.memory_space<vmem>>, %arg6: memref<8x32xf32, #tpu.memory_space<vmem>>, %arg7: memref<8x32xf32, #tpu.memory_space<vmem>>) attributes {dimension_semantics = [], scalar_prefetch = 0 : i64, scratch_operands = 2 : i64, tpu.core_type = #tpu.core_type<tc>} {
    %c0 = arith.constant 0 : index
    %c0_0 = arith.constant 0 : index
    %0 = vector.load %arg2[%c0, %c0_0] : memref<130x128xf32, #tpu.memory_space<vmem>>, vector<32x128xf32>
    %c32 = arith.constant 32 : index
    %c0_1 = arith.constant 0 : index
    %1 = vector.load %arg2[%c32, %c0_1] : memref<130x128xf32, #tpu.memory_space<vmem>>, vector<32x128xf32>
    %c64 = arith.constant 64 : index
    %c0_2 = arith.constant 0 : index
    %2 = vector.load %arg2[%c64, %c0_2] : memref<130x128xf32, #tpu.memory_space<vmem>>, vector<32x128xf32>
    %c96 = arith.constant 96 : index
    %c0_3 = arith.constant 0 : index
    %3 = vector.load %arg2[%c96, %c0_3] : memref<130x128xf32, #tpu.memory_space<vmem>>, vector<32x128xf32>
    %c128 = arith.constant 128 : index
    %c0_4 = arith.constant 0 : index
    %4 = vector.load %arg2[%c128, %c0_4] : memref<130x128xf32, #tpu.memory_space<vmem>>, vector<1x128xf32>
    %c129 = arith.constant 129 : index
    %c0_5 = arith.constant 0 : index
    %5 = vector.load %arg2[%c129, %c0_5] : memref<130x128xf32, #tpu.memory_space<vmem>>, vector<1x128xf32>
    %c0_6 = arith.constant 0 : index
    %c0_7 = arith.constant 0 : index
    %6 = vector.load %arg1[%c0_6, %c0_7] : memref<159x32xf32, #tpu.memory_space<vmem>>, vector<32x32xf32>
    %c32_8 = arith.constant 32 : index
    %c0_9 = arith.constant 0 : index
    %7 = vector.load %arg1[%c32_8, %c0_9] : memref<159x32xf32, #tpu.memory_space<vmem>>, vector<32x32xf32>
    %c64_10 = arith.constant 64 : index
    %c0_11 = arith.constant 0 : index
    %8 = vector.load %arg1[%c64_10, %c0_11] : memref<159x32xf32, #tpu.memory_space<vmem>>, vector<32x32xf32>
    %c96_12 = arith.constant 96 : index
    %c0_13 = arith.constant 0 : index
    %9 = vector.load %arg1[%c96_12, %c0_13] : memref<159x32xf32, #tpu.memory_space<vmem>>, vector<32x32xf32>
    %c128_14 = arith.constant 128 : index
    %c0_15 = arith.constant 0 : index
    %10 = vector.load %arg1[%c128_14, %c0_15] : memref<159x32xf32, #tpu.memory_space<vmem>>, vector<16x32xf32>
    %c144 = arith.constant 144 : index
    %c0_16 = arith.constant 0 : index
    %11 = vector.load %arg1[%c144, %c0_16] : memref<159x32xf32, #tpu.memory_space<vmem>>, vector<8x32xf32>
    %c152 = arith.constant 152 : index
    %c0_17 = arith.constant 0 : index
    %12 = vector.load %arg1[%c152, %c0_17] : memref<159x32xf32, #tpu.memory_space<vmem>>, vector<1x32xf32>
    %c153 = arith.constant 153 : index
    %c0_18 = arith.constant 0 : index
    %13 = vector.load %arg1[%c153, %c0_18] : memref<159x32xf32, #tpu.memory_space<vmem>>, vector<1x32xf32>
    %c154 = arith.constant 154 : index
    %c0_19 = arith.constant 0 : index
    %14 = vector.load %arg1[%c154, %c0_19] : memref<159x32xf32, #tpu.memory_space<vmem>>, vector<1x32xf32>
    %c155 = arith.constant 155 : index
    %c0_20 = arith.constant 0 : index
    %15 = vector.load %arg1[%c155, %c0_20] : memref<159x32xf32, #tpu.memory_space<vmem>>, vector<1x32xf32>
    %c156 = arith.constant 156 : index
    %c0_21 = arith.constant 0 : index
    %16 = vector.load %arg1[%c156, %c0_21] : memref<159x32xf32, #tpu.memory_space<vmem>>, vector<1x32xf32>
    %c157 = arith.constant 157 : index
    %c0_22 = arith.constant 0 : index
    %17 = vector.load %arg1[%c157, %c0_22] : memref<159x32xf32, #tpu.memory_space<vmem>>, vector<1x8xf32>
    %c158 = arith.constant 158 : index
    %c0_23 = arith.constant 0 : index
    %18 = vector.load %arg1[%c158, %c0_23] : memref<159x32xf32, #tpu.memory_space<vmem>>, vector<1x16xf32>
    %19 = tpu.iota {dimensions = array<i32: 1>} : vector<8x32xi32>
    %20 = tpu.iota {dimensions = array<i32: 1>} : vector<1x128xi32>
    %c64_i32 = arith.constant 64 : i32
    %21 = vector.broadcast %c64_i32 : i32 to vector<1x128xi32>
    %22 = arith.cmpi sge, %20, %21 : vector<1x128xi32>
    %c96_i32 = arith.constant 96 : i32
    %23 = vector.broadcast %c96_i32 : i32 to vector<1x128xi32>
    %24 = arith.cmpi slt, %20, %23 : vector<1x128xi32>
    %25 = arith.andi %22, %24 : vector<1x128xi1>
    %cst = arith.constant 1.000000e+00 : f32
    %cst_24 = arith.constant 5.000000e-01 : f32
    %26 = vector.broadcast %cst : f32 to vector<1x128xf32>
    %27 = vector.broadcast %cst_24 : f32 to vector<1x128xf32>
    %28 = arith.select %25, %26, %27 : vector<1x128xi1>, vector<1x128xf32>
    %cst_25 = arith.constant 0.000000e+00 : f32
    %cst_26 = arith.constant 5.000000e-01 : f32
    %29 = vector.broadcast %cst_25 : f32 to vector<1x128xf32>
    %30 = vector.broadcast %cst_26 : f32 to vector<1x128xf32>
    %31 = arith.select %25, %29, %30 : vector<1x128xi1>, vector<1x128xf32>
    %c0_27 = arith.constant 0 : index
    %c0_28 = arith.constant 0 : index
    %32 = vector.load %arg0[%c0_27, %c0_28] : memref<8x2xi32, #tpu.memory_space<vmem>>, vector<8x1xi32>
    %33 = vector.broadcast %32 : vector<8x1xi32> to vector<8x32xi32>
    %34 = arith.cmpi eq, %19, %33 : vector<8x32xi32>
    %35 = arith.extui %34 : vector<8x32xi1> to vector<8x32xi32>
    %36 = arith.sitofp %35 : vector<8x32xi32> to vector<8x32xf32>
    %cst_29 = arith.constant dense<0.000000e+00> : vector<8x32xf32>
    %37 = tpu.matmul %36, %6, %cst_29 {dimension_numbers = #tpu.dot_dimension_numbers<[1], [0], [0], [1], [0, 0, 1, 1], [], []>} : vector<8x32xf32>, vector<32x32xf32>, vector<8x32xf32> -> vector<8x32xf32>
    %cst_30 = arith.constant dense<0.000000e+00> : vector<8x128xf32>
    %38 = tpu.matmul %37, %0, %cst_30 {dimension_numbers = #tpu.dot_dimension_numbers<[1], [0], [0], [1], [0, 0, 1, 1], [], []>} : vector<8x32xf32>, vector<32x128xf32>, vector<8x128xf32> -> vector<8x128xf32>
    %39 = vector.broadcast %4 : vector<1x128xf32> to vector<8x128xf32>
    %40 = arith.addf %38, %39 : vector<8x128xf32>
    %41 = vector.extract_strided_slice %40 {offsets = [0, 0], sizes = [1, 128], strides = [1, 1]} : vector<8x128xf32> to vector<1x128xf32>
    %cst_31 = arith.constant dense<0.000000e+00> : vector<1x128xf32>
    %42 = tpu.matmul %15, %1, %cst_31 {dimension_numbers = #tpu.dot_dimension_numbers<[1], [0], [0], [1], [0, 0, 1, 1], [], []>} : vector<1x32xf32>, vector<32x128xf32>, vector<1x128xf32> -> vector<1x128xf32>
    %43 = arith.addf %41, %42 : vector<1x128xf32>
    %44 = arith.mulf %43, %28 : vector<1x128xf32>
    %45 = math.tanh %44 : vector<1x128xf32>
    %46 = arith.mulf %45, %28 : vector<1x128xf32>
    %47 = arith.addf %46, %31 : vector<1x128xf32>
    %48 = vector.extract_strided_slice %47 {offsets = [0, 0], sizes = [1, 32], strides = [1, 1]} : vector<1x128xf32> to vector<1x32xf32>
    %49 = vector.extract_strided_slice %47 {offsets = [0, 32], sizes = [1, 32], strides = [1, 1]} : vector<1x128xf32> to vector<1x32xf32>
    %50 = vector.extract_strided_slice %47 {offsets = [0, 64], sizes = [1, 32], strides = [1, 1]} : vector<1x128xf32> to vector<1x32xf32>
    %51 = vector.extract_strided_slice %47 {offsets = [0, 96], sizes = [1, 32], strides = [1, 1]} : vector<1x128xf32> to vector<1x32xf32>
    %52 = arith.mulf %49, %16 : vector<1x32xf32>
    %53 = arith.mulf %48, %50 : vector<1x32xf32>
    %54 = arith.addf %52, %53 : vector<1x32xf32>
    %55 = math.tanh %54 : vector<1x32xf32>
    %56 = arith.mulf %51, %55 : vector<1x32xf32>
    %57 = vector.extract_strided_slice %40 {offsets = [1, 0], sizes = [1, 128], strides = [1, 1]} : vector<8x128xf32> to vector<1x128xf32>
    %cst_32 = arith.constant dense<0.000000e+00> : vector<1x128xf32>
    %58 = tpu.matmul %56, %1, %cst_32 {dimension_numbers = #tpu.dot_dimension_numbers<[1], [0], [0], [1], [0, 0, 1, 1], [], []>} : vector<1x32xf32>, vector<32x128xf32>, vector<1x128xf32> -> vector<1x128xf32>
    %59 = arith.addf %57, %58 : vector<1x128xf32>
    %60 = arith.mulf %59, %28 : vector<1x128xf32>
    %61 = math.tanh %60 : vector<1x128xf32>
    %62 = arith.mulf %61, %28 : vector<1x128xf32>
    %63 = arith.addf %62, %31 : vector<1x128xf32>
    %64 = vector.extract_strided_slice %63 {offsets = [0, 0], sizes = [1, 32], strides = [1, 1]} : vector<1x128xf32> to vector<1x32xf32>
    %65 = vector.extract_strided_slice %63 {offsets = [0, 32], sizes = [1, 32], strides = [1, 1]} : vector<1x128xf32> to vector<1x32xf32>
    %66 = vector.extract_strided_slice %63 {offsets = [0, 64], sizes = [1, 32], strides = [1, 1]} : vector<1x128xf32> to vector<1x32xf32>
    %67 = vector.extract_strided_slice %63 {offsets = [0, 96], sizes = [1, 32], strides = [1, 1]} : vector<1x128xf32> to vector<1x32xf32>
    %68 = arith.mulf %65, %54 : vector<1x32xf32>
    %69 = arith.mulf %64, %66 : vector<1x32xf32>
    %70 = arith.addf %68, %69 : vector<1x32xf32>
    %71 = math.tanh %70 : vector<1x32xf32>
    %72 = arith.mulf %67, %71 : vector<1x32xf32>
    %73 = vector.extract_strided_slice %40 {offsets = [2, 0], sizes = [1, 128], strides = [1, 1]} : vector<8x128xf32> to vector<1x128xf32>
    %cst_33 = arith.constant dense<0.000000e+00> : vector<1x128xf32>
    %74 = tpu.matmul %72, %1, %cst_33 {dimension_numbers = #tpu.dot_dimension_numbers<[1], [0], [0], [1], [0, 0, 1, 1], [], []>} : vector<1x32xf32>, vector<32x128xf32>, vector<1x128xf32> -> vector<1x128xf32>
    %75 = arith.addf %73, %74 : vector<1x128xf32>
    %76 = arith.mulf %75, %28 : vector<1x128xf32>
    %77 = math.tanh %76 : vector<1x128xf32>
    %78 = arith.mulf %77, %28 : vector<1x128xf32>
    %79 = arith.addf %78, %31 : vector<1x128xf32>
    %80 = vector.extract_strided_slice %79 {offsets = [0, 0], sizes = [1, 32], strides = [1, 1]} : vector<1x128xf32> to vector<1x32xf32>
    %81 = vector.extract_strided_slice %79 {offsets = [0, 32], sizes = [1, 32], strides = [1, 1]} : vector<1x128xf32> to vector<1x32xf32>
    %82 = vector.extract_strided_slice %79 {offsets = [0, 64], sizes = [1, 32], strides = [1, 1]} : vector<1x128xf32> to vector<1x32xf32>
    %83 = vector.extract_strided_slice %79 {offsets = [0, 96], sizes = [1, 32], strides = [1, 1]} : vector<1x128xf32> to vector<1x32xf32>
    %84 = arith.mulf %81, %70 : vector<1x32xf32>
    %85 = arith.mulf %80, %82 : vector<1x32xf32>
    %86 = arith.addf %84, %85 : vector<1x32xf32>
    %87 = math.tanh %86 : vector<1x32xf32>
    %88 = arith.mulf %83, %87 : vector<1x32xf32>
    %89 = vector.extract_strided_slice %40 {offsets = [3, 0], sizes = [1, 128], strides = [1, 1]} : vector<8x128xf32> to vector<1x128xf32>
    %cst_34 = arith.constant dense<0.000000e+00> : vector<1x128xf32>
    %90 = tpu.matmul %88, %1, %cst_34 {dimension_numbers = #tpu.dot_dimension_numbers<[1], [0], [0], [1], [0, 0, 1, 1], [], []>} : vector<1x32xf32>, vector<32x128xf32>, vector<1x128xf32> -> vector<1x128xf32>
    %91 = arith.addf %89, %90 : vector<1x128xf32>
    %92 = arith.mulf %91, %28 : vector<1x128xf32>
    %93 = math.tanh %92 : vector<1x128xf32>
    %94 = arith.mulf %93, %28 : vector<1x128xf32>
    %95 = arith.addf %94, %31 : vector<1x128xf32>
    %96 = vector.extract_strided_slice %95 {offsets = [0, 0], sizes = [1, 32], strides = [1, 1]} : vector<1x128xf32> to vector<1x32xf32>
    %97 = vector.extract_strided_slice %95 {offsets = [0, 32], sizes = [1, 32], strides = [1, 1]} : vector<1x128xf32> to vector<1x32xf32>
    %98 = vector.extract_strided_slice %95 {offsets = [0, 64], sizes = [1, 32], strides = [1, 1]} : vector<1x128xf32> to vector<1x32xf32>
    %99 = vector.extract_strided_slice %95 {offsets = [0, 96], sizes = [1, 32], strides = [1, 1]} : vector<1x128xf32> to vector<1x32xf32>
    %100 = arith.mulf %97, %86 : vector<1x32xf32>
    %101 = arith.mulf %96, %98 : vector<1x32xf32>
    %102 = arith.addf %100, %101 : vector<1x32xf32>
    %103 = math.tanh %102 : vector<1x32xf32>
    %104 = arith.mulf %99, %103 : vector<1x32xf32>
    %105 = vector.extract_strided_slice %40 {offsets = [4, 0], sizes = [1, 128], strides = [1, 1]} : vector<8x128xf32> to vector<1x128xf32>
    %cst_35 = arith.constant dense<0.000000e+00> : vector<1x128xf32>
    %106 = tpu.matmul %104, %1, %cst_35 {dimension_numbers = #tpu.dot_dimension_numbers<[1], [0], [0], [1], [0, 0, 1, 1], [], []>} : vector<1x32xf32>, vector<32x128xf32>, vector<1x128xf32> -> vector<1x128xf32>
    %107 = arith.addf %105, %106 : vector<1x128xf32>
    %108 = arith.mulf %107, %28 : vector<1x128xf32>
    %109 = math.tanh %108 : vector<1x128xf32>
    %110 = arith.mulf %109, %28 : vector<1x128xf32>
    %111 = arith.addf %110, %31 : vector<1x128xf32>
    %112 = vector.extract_strided_slice %111 {offsets = [0, 0], sizes = [1, 32], strides = [1, 1]} : vector<1x128xf32> to vector<1x32xf32>
    %113 = vector.extract_strided_slice %111 {offsets = [0, 32], sizes = [1, 32], strides = [1, 1]} : vector<1x128xf32> to vector<1x32xf32>
    %114 = vector.extract_strided_slice %111 {offsets = [0, 64], sizes = [1, 32], strides = [1, 1]} : vector<1x128xf32> to vector<1x32xf32>
    %115 = vector.extract_strided_slice %111 {offsets = [0, 96], sizes = [1, 32], strides = [1, 1]} : vector<1x128xf32> to vector<1x32xf32>
    %116 = arith.mulf %113, %102 : vector<1x32xf32>
    %117 = arith.mulf %112, %114 : vector<1x32xf32>
    %118 = arith.addf %116, %117 : vector<1x32xf32>
    %119 = math.tanh %118 : vector<1x32xf32>
    %120 = arith.mulf %115, %119 : vector<1x32xf32>
    %121 = vector.extract_strided_slice %40 {offsets = [5, 0], sizes = [1, 128], strides = [1, 1]} : vector<8x128xf32> to vector<1x128xf32>
    %cst_36 = arith.constant dense<0.000000e+00> : vector<1x128xf32>
    %122 = tpu.matmul %120, %1, %cst_36 {dimension_numbers = #tpu.dot_dimension_numbers<[1], [0], [0], [1], [0, 0, 1, 1], [], []>} : vector<1x32xf32>, vector<32x128xf32>, vector<1x128xf32> -> vector<1x128xf32>
    %123 = arith.addf %121, %122 : vector<1x128xf32>
    %124 = arith.mulf %123, %28 : vector<1x128xf32>
    %125 = math.tanh %124 : vector<1x128xf32>
    %126 = arith.mulf %125, %28 : vector<1x128xf32>
    %127 = arith.addf %126, %31 : vector<1x128xf32>
    %128 = vector.extract_strided_slice %127 {offsets = [0, 0], sizes = [1, 32], strides = [1, 1]} : vector<1x128xf32> to vector<1x32xf32>
    %129 = vector.extract_strided_slice %127 {offsets = [0, 32], sizes = [1, 32], strides = [1, 1]} : vector<1x128xf32> to vector<1x32xf32>
    %130 = vector.extract_strided_slice %127 {offsets = [0, 64], sizes = [1, 32], strides = [1, 1]} : vector<1x128xf32> to vector<1x32xf32>
    %131 = vector.extract_strided_slice %127 {offsets = [0, 96], sizes = [1, 32], strides = [1, 1]} : vector<1x128xf32> to vector<1x32xf32>
    %132 = arith.mulf %129, %118 : vector<1x32xf32>
    %133 = arith.mulf %128, %130 : vector<1x32xf32>
    %134 = arith.addf %132, %133 : vector<1x32xf32>
    %135 = math.tanh %134 : vector<1x32xf32>
    %136 = arith.mulf %131, %135 : vector<1x32xf32>
    %137 = vector.extract_strided_slice %40 {offsets = [6, 0], sizes = [1, 128], strides = [1, 1]} : vector<8x128xf32> to vector<1x128xf32>
    %cst_37 = arith.constant dense<0.000000e+00> : vector<1x128xf32>
    %138 = tpu.matmul %136, %1, %cst_37 {dimension_numbers = #tpu.dot_dimension_numbers<[1], [0], [0], [1], [0, 0, 1, 1], [], []>} : vector<1x32xf32>, vector<32x128xf32>, vector<1x128xf32> -> vector<1x128xf32>
    %139 = arith.addf %137, %138 : vector<1x128xf32>
    %140 = arith.mulf %139, %28 : vector<1x128xf32>
    %141 = math.tanh %140 : vector<1x128xf32>
    %142 = arith.mulf %141, %28 : vector<1x128xf32>
    %143 = arith.addf %142, %31 : vector<1x128xf32>
    %144 = vector.extract_strided_slice %143 {offsets = [0, 0], sizes = [1, 32], strides = [1, 1]} : vector<1x128xf32> to vector<1x32xf32>
    %145 = vector.extract_strided_slice %143 {offsets = [0, 32], sizes = [1, 32], strides = [1, 1]} : vector<1x128xf32> to vector<1x32xf32>
    %146 = vector.extract_strided_slice %143 {offsets = [0, 64], sizes = [1, 32], strides = [1, 1]} : vector<1x128xf32> to vector<1x32xf32>
    %147 = vector.extract_strided_slice %143 {offsets = [0, 96], sizes = [1, 32], strides = [1, 1]} : vector<1x128xf32> to vector<1x32xf32>
    %148 = arith.mulf %145, %134 : vector<1x32xf32>
    %149 = arith.mulf %144, %146 : vector<1x32xf32>
    %150 = arith.addf %148, %149 : vector<1x32xf32>
    %151 = math.tanh %150 : vector<1x32xf32>
    %152 = arith.mulf %147, %151 : vector<1x32xf32>
    %153 = vector.extract_strided_slice %40 {offsets = [7, 0], sizes = [1, 128], strides = [1, 1]} : vector<8x128xf32> to vector<1x128xf32>
    %cst_38 = arith.constant dense<0.000000e+00> : vector<1x128xf32>
    %154 = tpu.matmul %152, %1, %cst_38 {dimension_numbers = #tpu.dot_dimension_numbers<[1], [0], [0], [1], [0, 0, 1, 1], [], []>} : vector<1x32xf32>, vector<32x128xf32>, vector<1x128xf32> -> vector<1x128xf32>
    %155 = arith.addf %153, %154 : vector<1x128xf32>
    %156 = arith.mulf %155, %28 : vector<1x128xf32>
    %157 = math.tanh %156 : vector<1x128xf32>
    %158 = arith.mulf %157, %28 : vector<1x128xf32>
    %159 = arith.addf %158, %31 : vector<1x128xf32>
    %160 = vector.extract_strided_slice %159 {offsets = [0, 0], sizes = [1, 32], strides = [1, 1]} : vector<1x128xf32> to vector<1x32xf32>
    %161 = vector.extract_strided_slice %159 {offsets = [0, 32], sizes = [1, 32], strides = [1, 1]} : vector<1x128xf32> to vector<1x32xf32>
    %162 = vector.extract_strided_slice %159 {offsets = [0, 64], sizes = [1, 32], strides = [1, 1]} : vector<1x128xf32> to vector<1x32xf32>
    %163 = vector.extract_strided_slice %159 {offsets = [0, 96], sizes = [1, 32], strides = [1, 1]} : vector<1x128xf32> to vector<1x32xf32>
    %164 = arith.mulf %161, %150 : vector<1x32xf32>
    %165 = arith.mulf %160, %162 : vector<1x32xf32>
    %166 = arith.addf %164, %165 : vector<1x32xf32>
    %167 = math.tanh %166 : vector<1x32xf32>
    %168 = arith.mulf %163, %167 : vector<1x32xf32>
    %cst_39 = arith.constant dense<0.000000e+00> : vector<1x32xf32>
    %169 = tpu.matmul %168, %8, %cst_39 {dimension_numbers = #tpu.dot_dimension_numbers<[1], [0], [0], [1], [0, 0, 1, 1], [], []>} : vector<1x32xf32>, vector<32x32xf32>, vector<1x32xf32> -> vector<1x32xf32>
    %170 = arith.addf %169, %13 : vector<1x32xf32>
    %c0_40 = arith.constant 0 : index
    %c0_41 = arith.constant 0 : index
    %171 = vector.load %arg5[%c0_40, %c0_41] : memref<1x32xf32, #tpu.memory_space<vmem>>, vector<1x32xf32>
    tpu.vector_store %arg5[%c0_40, %c0_41], %170 {strides = array<i32>} : memref<1x32xf32, #tpu.memory_space<vmem>>, vector<1x32xf32>,
    %172 = vector.extract_strided_slice %170 {offsets = [0, 0], sizes = [1, 16], strides = [1, 1]} : vector<1x32xf32> to vector<1x16xf32>
    %173 = vector.extract_strided_slice %170 {offsets = [0, 16], sizes = [1, 16], strides = [1, 1]} : vector<1x32xf32> to vector<1x16xf32>
    %cst_42 = arith.constant 5.000000e-01 : f32
    %174 = vector.broadcast %cst_42 : f32 to vector<1x16xf32>
    %175 = arith.mulf %174, %173 : vector<1x16xf32>
    %176 = math.exp %175 : vector<1x16xf32>
    %177 = arith.mulf %18, %176 : vector<1x16xf32>
    %178 = arith.addf %172, %177 : vector<1x16xf32>
    %cst_43 = arith.constant dense<0.000000e+00> : vector<1x32xf32>
    %179 = tpu.matmul %178, %10, %cst_43 {dimension_numbers = #tpu.dot_dimension_numbers<[1], [0], [0], [1], [0, 0, 1, 1], [], []>} : vector<1x16xf32>, vector<16x32xf32>, vector<1x32xf32> -> vector<1x32xf32>
    %cst_44 = arith.constant dense<0.000000e+00> : vector<1x32xf32>
    %180 = tpu.matmul %17, %11, %cst_44 {dimension_numbers = #tpu.dot_dimension_numbers<[1], [0], [0], [1], [0, 0, 1, 1], [], []>} : vector<1x8xf32>, vector<8x32xf32>, vector<1x32xf32> -> vector<1x32xf32>
    %181 = arith.addf %179, %180 : vector<1x32xf32>
    %182 = arith.addf %181, %12 : vector<1x32xf32>
    %cst_45 = arith.constant 0.000000e+00 : f32
    %183 = vector.broadcast %cst_45 : f32 to vector<1x32xf32>
    %cst_46 = arith.constant 0.000000e+00 : f32
    %184 = vector.broadcast %cst_46 : f32 to vector<32x32xf32>
    %185 = arith.maximumf %7, %184 : vector<32x32xf32>
    %cst_47 = arith.constant dense<0.000000e+00> : vector<32x128xf32>
    %186 = tpu.matmul %185, %2, %cst_47 {dimension_numbers = #tpu.dot_dimension_numbers<[1], [0], [0], [1], [0, 0, 1, 1], [], []>} : vector<32x32xf32>, vector<32x128xf32>, vector<32x128xf32> -> vector<32x128xf32>
    %c0_48 = arith.constant 0 : index
    %c1 = arith.constant 1 : index
    %187 = vector.load %arg0[%c0_48, %c1] : memref<8x2xi32, #tpu.memory_space<vmem>>, vector<8x1xi32>
    %188 = vector.broadcast %187 : vector<8x1xi32> to vector<8x32xi32>
    %189 = arith.cmpi eq, %19, %188 : vector<8x32xi32>
    %190 = arith.extui %189 : vector<8x32xi1> to vector<8x32xi32>
    %191 = arith.sitofp %190 : vector<8x32xi32> to vector<8x32xf32>
    %cst_49 = arith.constant dense<0.000000e+00> : vector<8x128xf32>
    %192 = tpu.matmul %191, %186, %cst_49 {dimension_numbers = #tpu.dot_dimension_numbers<[1], [0], [0], [1], [0, 0, 1, 1], [], []>} : vector<8x32xf32>, vector<32x128xf32>, vector<8x128xf32> -> vector<8x128xf32>
    %193 = vector.broadcast %5 : vector<1x128xf32> to vector<8x128xf32>
    %194 = arith.addf %192, %193 : vector<8x128xf32>
    %195 = vector.extract_strided_slice %194 {offsets = [0, 0], sizes = [1, 128], strides = [1, 1]} : vector<8x128xf32> to vector<1x128xf32>
    %cst_50 = arith.constant dense<0.000000e+00> : vector<1x128xf32>
    %196 = tpu.matmul %182, %3, %cst_50 {dimension_numbers = #tpu.dot_dimension_numbers<[1], [0], [0], [1], [0, 0, 1, 1], [], []>} : vector<1x32xf32>, vector<32x128xf32>, vector<1x128xf32> -> vector<1x128xf32>
    %197 = arith.addf %195, %196 : vector<1x128xf32>
    %198 = arith.mulf %197, %28 : vector<1x128xf32>
    %199 = math.tanh %198 : vector<1x128xf32>
    %200 = arith.mulf %199, %28 : vector<1x128xf32>
    %201 = arith.addf %200, %31 : vector<1x128xf32>
    %202 = vector.extract_strided_slice %201 {offsets = [0, 0], sizes = [1, 32], strides = [1, 1]} : vector<1x128xf32> to vector<1x32xf32>
    %203 = vector.extract_strided_slice %201 {offsets = [0, 32], sizes = [1, 32], strides = [1, 1]} : vector<1x128xf32> to vector<1x32xf32>
    %204 = vector.extract_strided_slice %201 {offsets = [0, 64], sizes = [1, 32], strides = [1, 1]} : vector<1x128xf32> to vector<1x32xf32>
    %205 = vector.extract_strided_slice %201 {offsets = [0, 96], sizes = [1, 32], strides = [1, 1]} : vector<1x128xf32> to vector<1x32xf32>
    %206 = arith.mulf %203, %183 : vector<1x32xf32>
    %207 = arith.mulf %202, %204 : vector<1x32xf32>
    %208 = arith.addf %206, %207 : vector<1x32xf32>
    %209 = math.tanh %208 : vector<1x32xf32>
    %210 = arith.mulf %205, %209 : vector<1x32xf32>
    %c0_51 = arith.constant 0 : index
    %c0_52 = arith.constant 0 : index
    %211 = vector.load %arg6[%c0_51, %c0_52] : memref<8x32xf32, #tpu.memory_space<vmem>>, vector<1x32xf32>
    tpu.vector_store %arg6[%c0_51, %c0_52], %210 {strides = array<i32>} : memref<8x32xf32, #tpu.memory_space<vmem>>, vector<1x32xf32>,
    %212 = vector.extract_strided_slice %194 {offsets = [1, 0], sizes = [1, 128], strides = [1, 1]} : vector<8x128xf32> to vector<1x128xf32>
    %cst_53 = arith.constant dense<0.000000e+00> : vector<1x128xf32>
    %213 = tpu.matmul %210, %3, %cst_53 {dimension_numbers = #tpu.dot_dimension_numbers<[1], [0], [0], [1], [0, 0, 1, 1], [], []>} : vector<1x32xf32>, vector<32x128xf32>, vector<1x128xf32> -> vector<1x128xf32>
    %214 = arith.addf %212, %213 : vector<1x128xf32>
    %215 = arith.mulf %214, %28 : vector<1x128xf32>
    %216 = math.tanh %215 : vector<1x128xf32>
    %217 = arith.mulf %216, %28 : vector<1x128xf32>
    %218 = arith.addf %217, %31 : vector<1x128xf32>
    %219 = vector.extract_strided_slice %218 {offsets = [0, 0], sizes = [1, 32], strides = [1, 1]} : vector<1x128xf32> to vector<1x32xf32>
    %220 = vector.extract_strided_slice %218 {offsets = [0, 32], sizes = [1, 32], strides = [1, 1]} : vector<1x128xf32> to vector<1x32xf32>
    %221 = vector.extract_strided_slice %218 {offsets = [0, 64], sizes = [1, 32], strides = [1, 1]} : vector<1x128xf32> to vector<1x32xf32>
    %222 = vector.extract_strided_slice %218 {offsets = [0, 96], sizes = [1, 32], strides = [1, 1]} : vector<1x128xf32> to vector<1x32xf32>
    %223 = arith.mulf %220, %208 : vector<1x32xf32>
    %224 = arith.mulf %219, %221 : vector<1x32xf32>
    %225 = arith.addf %223, %224 : vector<1x32xf32>
    %226 = math.tanh %225 : vector<1x32xf32>
    %227 = arith.mulf %222, %226 : vector<1x32xf32>
    %c1_54 = arith.constant 1 : index
    %c0_55 = arith.constant 0 : index
    %228 = vector.load %arg6[%c1_54, %c0_55] : memref<8x32xf32, #tpu.memory_space<vmem>>, vector<1x32xf32>
    tpu.vector_store %arg6[%c1_54, %c0_55], %227 {strides = array<i32>} : memref<8x32xf32, #tpu.memory_space<vmem>>, vector<1x32xf32>,
    %229 = vector.extract_strided_slice %194 {offsets = [2, 0], sizes = [1, 128], strides = [1, 1]} : vector<8x128xf32> to vector<1x128xf32>
    %cst_56 = arith.constant dense<0.000000e+00> : vector<1x128xf32>
    %230 = tpu.matmul %227, %3, %cst_56 {dimension_numbers = #tpu.dot_dimension_numbers<[1], [0], [0], [1], [0, 0, 1, 1], [], []>} : vector<1x32xf32>, vector<32x128xf32>, vector<1x128xf32> -> vector<1x128xf32>
    %231 = arith.addf %229, %230 : vector<1x128xf32>
    %232 = arith.mulf %231, %28 : vector<1x128xf32>
    %233 = math.tanh %232 : vector<1x128xf32>
    %234 = arith.mulf %233, %28 : vector<1x128xf32>
    %235 = arith.addf %234, %31 : vector<1x128xf32>
    %236 = vector.extract_strided_slice %235 {offsets = [0, 0], sizes = [1, 32], strides = [1, 1]} : vector<1x128xf32> to vector<1x32xf32>
    %237 = vector.extract_strided_slice %235 {offsets = [0, 32], sizes = [1, 32], strides = [1, 1]} : vector<1x128xf32> to vector<1x32xf32>
    %238 = vector.extract_strided_slice %235 {offsets = [0, 64], sizes = [1, 32], strides = [1, 1]} : vector<1x128xf32> to vector<1x32xf32>
    %239 = vector.extract_strided_slice %235 {offsets = [0, 96], sizes = [1, 32], strides = [1, 1]} : vector<1x128xf32> to vector<1x32xf32>
    %240 = arith.mulf %237, %225 : vector<1x32xf32>
    %241 = arith.mulf %236, %238 : vector<1x32xf32>
    %242 = arith.addf %240, %241 : vector<1x32xf32>
    %243 = math.tanh %242 : vector<1x32xf32>
    %244 = arith.mulf %239, %243 : vector<1x32xf32>
    %c2 = arith.constant 2 : index
    %c0_57 = arith.constant 0 : index
    %245 = vector.load %arg6[%c2, %c0_57] : memref<8x32xf32, #tpu.memory_space<vmem>>, vector<1x32xf32>
    tpu.vector_store %arg6[%c2, %c0_57], %244 {strides = array<i32>} : memref<8x32xf32, #tpu.memory_space<vmem>>, vector<1x32xf32>,
    %246 = vector.extract_strided_slice %194 {offsets = [3, 0], sizes = [1, 128], strides = [1, 1]} : vector<8x128xf32> to vector<1x128xf32>
    %cst_58 = arith.constant dense<0.000000e+00> : vector<1x128xf32>
    %247 = tpu.matmul %244, %3, %cst_58 {dimension_numbers = #tpu.dot_dimension_numbers<[1], [0], [0], [1], [0, 0, 1, 1], [], []>} : vector<1x32xf32>, vector<32x128xf32>, vector<1x128xf32> -> vector<1x128xf32>
    %248 = arith.addf %246, %247 : vector<1x128xf32>
    %249 = arith.mulf %248, %28 : vector<1x128xf32>
    %250 = math.tanh %249 : vector<1x128xf32>
    %251 = arith.mulf %250, %28 : vector<1x128xf32>
    %252 = arith.addf %251, %31 : vector<1x128xf32>
    %253 = vector.extract_strided_slice %252 {offsets = [0, 0], sizes = [1, 32], strides = [1, 1]} : vector<1x128xf32> to vector<1x32xf32>
    %254 = vector.extract_strided_slice %252 {offsets = [0, 32], sizes = [1, 32], strides = [1, 1]} : vector<1x128xf32> to vector<1x32xf32>
    %255 = vector.extract_strided_slice %252 {offsets = [0, 64], sizes = [1, 32], strides = [1, 1]} : vector<1x128xf32> to vector<1x32xf32>
    %256 = vector.extract_strided_slice %252 {offsets = [0, 96], sizes = [1, 32], strides = [1, 1]} : vector<1x128xf32> to vector<1x32xf32>
    %257 = arith.mulf %254, %242 : vector<1x32xf32>
    %258 = arith.mulf %253, %255 : vector<1x32xf32>
    %259 = arith.addf %257, %258 : vector<1x32xf32>
    %260 = math.tanh %259 : vector<1x32xf32>
    %261 = arith.mulf %256, %260 : vector<1x32xf32>
    %c3 = arith.constant 3 : index
    %c0_59 = arith.constant 0 : index
    %262 = vector.load %arg6[%c3, %c0_59] : memref<8x32xf32, #tpu.memory_space<vmem>>, vector<1x32xf32>
    tpu.vector_store %arg6[%c3, %c0_59], %261 {strides = array<i32>} : memref<8x32xf32, #tpu.memory_space<vmem>>, vector<1x32xf32>,
    %263 = vector.extract_strided_slice %194 {offsets = [4, 0], sizes = [1, 128], strides = [1, 1]} : vector<8x128xf32> to vector<1x128xf32>
    %cst_60 = arith.constant dense<0.000000e+00> : vector<1x128xf32>
    %264 = tpu.matmul %261, %3, %cst_60 {dimension_numbers = #tpu.dot_dimension_numbers<[1], [0], [0], [1], [0, 0, 1, 1], [], []>} : vector<1x32xf32>, vector<32x128xf32>, vector<1x128xf32> -> vector<1x128xf32>
    %265 = arith.addf %263, %264 : vector<1x128xf32>
    %266 = arith.mulf %265, %28 : vector<1x128xf32>
    %267 = math.tanh %266 : vector<1x128xf32>
    %268 = arith.mulf %267, %28 : vector<1x128xf32>
    %269 = arith.addf %268, %31 : vector<1x128xf32>
    %270 = vector.extract_strided_slice %269 {offsets = [0, 0], sizes = [1, 32], strides = [1, 1]} : vector<1x128xf32> to vector<1x32xf32>
    %271 = vector.extract_strided_slice %269 {offsets = [0, 32], sizes = [1, 32], strides = [1, 1]} : vector<1x128xf32> to vector<1x32xf32>
    %272 = vector.extract_strided_slice %269 {offsets = [0, 64], sizes = [1, 32], strides = [1, 1]} : vector<1x128xf32> to vector<1x32xf32>
    %273 = vector.extract_strided_slice %269 {offsets = [0, 96], sizes = [1, 32], strides = [1, 1]} : vector<1x128xf32> to vector<1x32xf32>
    %274 = arith.mulf %271, %259 : vector<1x32xf32>
    %275 = arith.mulf %270, %272 : vector<1x32xf32>
    %276 = arith.addf %274, %275 : vector<1x32xf32>
    %277 = math.tanh %276 : vector<1x32xf32>
    %278 = arith.mulf %273, %277 : vector<1x32xf32>
    %c4 = arith.constant 4 : index
    %c0_61 = arith.constant 0 : index
    %279 = vector.load %arg6[%c4, %c0_61] : memref<8x32xf32, #tpu.memory_space<vmem>>, vector<1x32xf32>
    tpu.vector_store %arg6[%c4, %c0_61], %278 {strides = array<i32>} : memref<8x32xf32, #tpu.memory_space<vmem>>, vector<1x32xf32>,
    %280 = vector.extract_strided_slice %194 {offsets = [5, 0], sizes = [1, 128], strides = [1, 1]} : vector<8x128xf32> to vector<1x128xf32>
    %cst_62 = arith.constant dense<0.000000e+00> : vector<1x128xf32>
    %281 = tpu.matmul %278, %3, %cst_62 {dimension_numbers = #tpu.dot_dimension_numbers<[1], [0], [0], [1], [0, 0, 1, 1], [], []>} : vector<1x32xf32>, vector<32x128xf32>, vector<1x128xf32> -> vector<1x128xf32>
    %282 = arith.addf %280, %281 : vector<1x128xf32>
    %283 = arith.mulf %282, %28 : vector<1x128xf32>
    %284 = math.tanh %283 : vector<1x128xf32>
    %285 = arith.mulf %284, %28 : vector<1x128xf32>
    %286 = arith.addf %285, %31 : vector<1x128xf32>
    %287 = vector.extract_strided_slice %286 {offsets = [0, 0], sizes = [1, 32], strides = [1, 1]} : vector<1x128xf32> to vector<1x32xf32>
    %288 = vector.extract_strided_slice %286 {offsets = [0, 32], sizes = [1, 32], strides = [1, 1]} : vector<1x128xf32> to vector<1x32xf32>
    %289 = vector.extract_strided_slice %286 {offsets = [0, 64], sizes = [1, 32], strides = [1, 1]} : vector<1x128xf32> to vector<1x32xf32>
    %290 = vector.extract_strided_slice %286 {offsets = [0, 96], sizes = [1, 32], strides = [1, 1]} : vector<1x128xf32> to vector<1x32xf32>
    %291 = arith.mulf %288, %276 : vector<1x32xf32>
    %292 = arith.mulf %287, %289 : vector<1x32xf32>
    %293 = arith.addf %291, %292 : vector<1x32xf32>
    %294 = math.tanh %293 : vector<1x32xf32>
    %295 = arith.mulf %290, %294 : vector<1x32xf32>
    %c5 = arith.constant 5 : index
    %c0_63 = arith.constant 0 : index
    %296 = vector.load %arg6[%c5, %c0_63] : memref<8x32xf32, #tpu.memory_space<vmem>>, vector<1x32xf32>
    tpu.vector_store %arg6[%c5, %c0_63], %295 {strides = array<i32>} : memref<8x32xf32, #tpu.memory_space<vmem>>, vector<1x32xf32>,
    %297 = vector.extract_strided_slice %194 {offsets = [6, 0], sizes = [1, 128], strides = [1, 1]} : vector<8x128xf32> to vector<1x128xf32>
    %cst_64 = arith.constant dense<0.000000e+00> : vector<1x128xf32>
    %298 = tpu.matmul %295, %3, %cst_64 {dimension_numbers = #tpu.dot_dimension_numbers<[1], [0], [0], [1], [0, 0, 1, 1], [], []>} : vector<1x32xf32>, vector<32x128xf32>, vector<1x128xf32> -> vector<1x128xf32>
    %299 = arith.addf %297, %298 : vector<1x128xf32>
    %300 = arith.mulf %299, %28 : vector<1x128xf32>
    %301 = math.tanh %300 : vector<1x128xf32>
    %302 = arith.mulf %301, %28 : vector<1x128xf32>
    %303 = arith.addf %302, %31 : vector<1x128xf32>
    %304 = vector.extract_strided_slice %303 {offsets = [0, 0], sizes = [1, 32], strides = [1, 1]} : vector<1x128xf32> to vector<1x32xf32>
    %305 = vector.extract_strided_slice %303 {offsets = [0, 32], sizes = [1, 32], strides = [1, 1]} : vector<1x128xf32> to vector<1x32xf32>
    %306 = vector.extract_strided_slice %303 {offsets = [0, 64], sizes = [1, 32], strides = [1, 1]} : vector<1x128xf32> to vector<1x32xf32>
    %307 = vector.extract_strided_slice %303 {offsets = [0, 96], sizes = [1, 32], strides = [1, 1]} : vector<1x128xf32> to vector<1x32xf32>
    %308 = arith.mulf %305, %293 : vector<1x32xf32>
    %309 = arith.mulf %304, %306 : vector<1x32xf32>
    %310 = arith.addf %308, %309 : vector<1x32xf32>
    %311 = math.tanh %310 : vector<1x32xf32>
    %312 = arith.mulf %307, %311 : vector<1x32xf32>
    %c6 = arith.constant 6 : index
    %c0_65 = arith.constant 0 : index
    %313 = vector.load %arg6[%c6, %c0_65] : memref<8x32xf32, #tpu.memory_space<vmem>>, vector<1x32xf32>
    tpu.vector_store %arg6[%c6, %c0_65], %312 {strides = array<i32>} : memref<8x32xf32, #tpu.memory_space<vmem>>, vector<1x32xf32>,
    %314 = vector.extract_strided_slice %194 {offsets = [7, 0], sizes = [1, 128], strides = [1, 1]} : vector<8x128xf32> to vector<1x128xf32>
    %cst_66 = arith.constant dense<0.000000e+00> : vector<1x128xf32>
    %315 = tpu.matmul %312, %3, %cst_66 {dimension_numbers = #tpu.dot_dimension_numbers<[1], [0], [0], [1], [0, 0, 1, 1], [], []>} : vector<1x32xf32>, vector<32x128xf32>, vector<1x128xf32> -> vector<1x128xf32>
    %316 = arith.addf %314, %315 : vector<1x128xf32>
    %317 = arith.mulf %316, %28 : vector<1x128xf32>
    %318 = math.tanh %317 : vector<1x128xf32>
    %319 = arith.mulf %318, %28 : vector<1x128xf32>
    %320 = arith.addf %319, %31 : vector<1x128xf32>
    %321 = vector.extract_strided_slice %320 {offsets = [0, 0], sizes = [1, 32], strides = [1, 1]} : vector<1x128xf32> to vector<1x32xf32>
    %322 = vector.extract_strided_slice %320 {offsets = [0, 32], sizes = [1, 32], strides = [1, 1]} : vector<1x128xf32> to vector<1x32xf32>
    %323 = vector.extract_strided_slice %320 {offsets = [0, 64], sizes = [1, 32], strides = [1, 1]} : vector<1x128xf32> to vector<1x32xf32>
    %324 = vector.extract_strided_slice %320 {offsets = [0, 96], sizes = [1, 32], strides = [1, 1]} : vector<1x128xf32> to vector<1x32xf32>
    %325 = arith.mulf %322, %310 : vector<1x32xf32>
    %326 = arith.mulf %321, %323 : vector<1x32xf32>
    %327 = arith.addf %325, %326 : vector<1x32xf32>
    %328 = math.tanh %327 : vector<1x32xf32>
    %329 = arith.mulf %324, %328 : vector<1x32xf32>
    %c7 = arith.constant 7 : index
    %c0_67 = arith.constant 0 : index
    %330 = vector.load %arg6[%c7, %c0_67] : memref<8x32xf32, #tpu.memory_space<vmem>>, vector<1x32xf32>
    tpu.vector_store %arg6[%c7, %c0_67], %329 {strides = array<i32>} : memref<8x32xf32, #tpu.memory_space<vmem>>, vector<1x32xf32>,
    %c0_68 = arith.constant 0 : index
    %c0_69 = arith.constant 0 : index
    %331 = vector.load %arg6[%c0_68, %c0_69] : memref<8x32xf32, #tpu.memory_space<vmem>>, vector<8x32xf32>
    %cst_70 = arith.constant dense<0.000000e+00> : vector<8x32xf32>
    %332 = tpu.matmul %331, %9, %cst_70 {dimension_numbers = #tpu.dot_dimension_numbers<[1], [0], [0], [1], [0, 0, 1, 1], [], []>} : vector<8x32xf32>, vector<32x32xf32>, vector<8x32xf32> -> vector<8x32xf32>
    %333 = vector.broadcast %14 : vector<1x32xf32> to vector<8x32xf32>
    %334 = arith.addf %332, %333 : vector<8x32xf32>
    %cst_71 = arith.constant dense<0xFF800000> : vector<8xf32>
    %335 = vector.multi_reduction <maximumf>, %334, %cst_71 [1] : vector<8x32xf32> to vector<8xf32>
    %336 = vector.shape_cast %335 : vector<8xf32> to vector<8x1xf32>
    %337 = vector.broadcast %336 : vector<8x1xf32> to vector<8x32xf32>
    %338 = arith.subf %334, %337 : vector<8x32xf32>
    %339 = vector.broadcast %336 : vector<8x1xf32> to vector<8x32xf32>
    %340 = arith.subf %334, %339 : vector<8x32xf32>
    %341 = math.exp %340 : vector<8x32xf32>
    %cst_72 = arith.constant dense<0.000000e+00> : vector<8xf32>
    %342 = vector.multi_reduction <add>, %341, %cst_72 [1] : vector<8x32xf32> to vector<8xf32>
    %343 = vector.shape_cast %342 : vector<8xf32> to vector<8x1xf32>
    %344 = math.log %343 : vector<8x1xf32>
    %345 = vector.broadcast %344 : vector<8x1xf32> to vector<8x32xf32>
    %346 = arith.subf %338, %345 : vector<8x32xf32>
    %c0_73 = arith.constant 0 : index
    %c0_74 = arith.constant 0 : index
    %347 = vector.load %arg4[%c0_73, %c0_74] : memref<8x32xf32, #tpu.memory_space<vmem>>, vector<8x32xf32>
    tpu.vector_store %arg4[%c0_73, %c0_74], %346 {strides = array<i32>} : memref<8x32xf32, #tpu.memory_space<vmem>>, vector<8x32xf32>,
    %348 = vector.broadcast %336 : vector<8x1xf32> to vector<8x32xf32>
    %349 = arith.cmpf oeq, %334, %348 : vector<8x32xf32>
    %c32_i32 = arith.constant 32 : i32
    %350 = vector.broadcast %c32_i32 : i32 to vector<8x32xi32>
    %351 = arith.select %349, %19, %350 : vector<8x32xi1>, vector<8x32xi32>
    %cst_75 = arith.constant dense<2147483647> : vector<8xi32>
    %352 = vector.multi_reduction <minsi>, %351, %cst_75 [1] : vector<8x32xi32> to vector<8xi32>
    %353 = vector.shape_cast %352 : vector<8xi32> to vector<8x1xi32>
    %c0_76 = arith.constant 0 : index
    %c0_77 = arith.constant 0 : index
    %354 = vector.load %arg3[%c0_76, %c0_77] : memref<8x1xi32, #tpu.memory_space<vmem>>, vector<8x1xi32>
    tpu.vector_store %arg3[%c0_76, %c0_77], %353 {strides = array<i32>} : memref<8x1xi32, #tpu.memory_space<vmem>>, vector<8x1xi32>,
    return
  }
}

</mosaic_0001>

<bundles_post_ra>
// kernel: vae_forward.1
= control target key start
LH: loop header
LB: loop body
LE: loop exit
PB: predicated region body
PF: predicated region fallthrough
CT: control target
= control target key end

     0   :  { %v1392_v3 = vmov 0   ;;  %s1797_s0 = inlined_call_operand.vmem [shape: s32[8,2], index: 0, kind: input, shape index: {}]   ;;  %s1798_s1 = inlined_call_operand.vmem [shape: f32[159,32], index: 1, kind: input, shape index: {}]   ;;  %s1799_s2 = inlined_call_operand.vmem [shape: f32[130,128], index: 2, kind: input, shape index: {}]   ;;  %s1800_s3 = inlined_call_operand.vmem [shape: s32[8,1], index: 3, kind: output, shape index: {0}]   ;;  %s1801_s4 = inlined_call_operand.hbm [shape: f32[8,32], index: 4, kind: output, shape index: {1}]   ;;  %s1802_s5 = inlined_call_operand.vmem [shape: f32[1,32], index: 5, kind: output, shape index: {2}]  }
   0x1   :  { %v1433_v0 = vld [vmem:[%s1797_s0] sm:$0xff]  ;;  %v39_v1 = vld [vmem:[%s1798_s1 + $0x18] sm:$0xff]  ;;  %v38_v2 = vld [vmem:[%s1798_s1 + $0x10] sm:$0xff]  ;;  %1290 = vset.pattern.permute.xlu0 %v1392_v3 }
   0x2   :  { %92 = vmatpush.msra.mxu0 %v39_v1  ;;  %71 = vperm.xlu0 %1290, %v1433_v0  }
   0x3   :  { %11 = vsyncpa [#allocation5], 0  ;;  %v37_v4 = vld [vmem:[%s1798_s1 + $0x8] sm:$0xff]  ;;  %v36_v5 = vld [vmem:[%s1798_s1] sm:$0xff]  ;;  %vm76_vm0 = vcmask 261120   ;;  %v62_v14 = vlaneseq  ;;  %v1393_v17 = vmov 0.0  }
   0x4   :  { %93 = vmatpush.msra.mxu0 %v38_v2  ;;  %v25_v6 = vld [vmem:[%s1799_s2 + $0x38] sm:$0xff]  ;;  %v24_v7 = vld [vmem:[%s1799_s2 + $0x30] sm:$0xff]  ;;  %v23_v10 = vld [vmem:[%s1799_s2 + $0x28] sm:$0xff]  ;;  %s1394_s22 = smov 32   ;;  %v1395_v26 = vmov 0.5   ;;  %s1396_s25 = smov 64  }
   0x5   :  { %v21_v8 = vld [vmem:[%s1799_s2 + $0x18] sm:$0xff]  ;;  %139 = vmatpush.msra.mxu2 %v25_v6  ;;  %v20_v9 = vld [vmem:[%s1799_s2 + $0x10] sm:$0xff]  ;;  %v19_v11 = vld [vmem:[%s1799_s2 + $0x8] sm:$0xff]  ;;  %190 = vmatpush.msra.mxu3 %v25_v6  ;;  %v1473_v15 = vand.u32 127, %v62_v14  ;;  %vm587_vm5 = vcmask 64512   ;;  %vm576_vm6 = vcmask 253952  }
   0x6   :  { %94 = vmatpush.msra.mxu0 %v37_v4  ;;  %116 = vmatpush.msra.mxu1 %v21_v8  ;;  %v22_v12 = vld [vmem:[%s1799_s2 + $0x20] sm:$0xff]  ;;  %v58_v13 = vld [vmem:[%s1798_s1 + $0x9b] sm:$0x1]  ;;  %v59_v20 = vld [vmem:[%s1798_s1 + $0x9c] sm:$0x1]  ;;  %s1397_s10 = smov 112  }
   0x7   :  { %140 = vmatpush.msra.mxu2 %v24_v7  ;;  %191 = vmatpush.msra.mxu3 %v24_v7  ;;  %v18_v19 = vld [vmem:[%s1799_s2] sm:$0xff]  ;;  %vm64_vm2 = vcmp.ge.s32.totalorder %v1473_v15, 64  ;;  %vm65_vm3 = vcmp.lt.s32.totalorder %v1473_v15, 96  ;;  %vm611_vm7 = vcmask 130048   ;;  %vm816_vm9 = vcmask 254977   ;;  %s1238_s12 = sshll.u32 %s1801_s4, 4  ;;  %s1239_s12 = int_to_ptr.hbm [resolvable:$true] %s1238_s12 }
   0x8   :  { %95 = vmatpush.msra.mxu0 %v36_v5  ;;  %117 = vmatpush.msra.mxu1 %v20_v9  ;;  %v1293_v22 = vld [vmem:[%s1799_s2 + $0x80] ss:$0 sm:$0xff]  ;;  %vm66_vm4 = vmand %vm64_vm2, %vm65_vm3  ;;  %vm993_vm10 = vcmask 258052   ;;  %vm875_vm11 = vcmask 256002   ;;  %vm1052_vm12 = vcmask 259077   ;;  %vm934_vm13 = vcmask 257027  }
   0x9   :  { %141 = vmatpush.msra.mxu2 %v23_v10  ;;  %192 = vmatpush.msra.mxu3 %v23_v10  ;;  %v1493_v27 = vsel %vm66_vm4, 1.0, %v1395_v26  ;;  %v1497_v31 = vsel %vm66_vm4, 0.0, %v1395_v26  ;;  %vm1111_vm14 = vcmask 260102   ;;  %vm1170_vm15 = vcmask 261127  }
   0xa   :  { %244 = vmatpush.msrb.mxu0 %v25_v6  ;;  %118 = vmatpush.msra.mxu1 %v19_v11  ;;  %vm1227_vm3 = vcmask 7168  }
   0xb   :  { %142 = vmatpush.msra.mxu2 %v22_v12  ;;  %193 = vmatpush.msra.mxu3 %v22_v12 }
   0xc   :  { %245 = vmatpush.msrb.mxu0 %v24_v7  ;;  %1256 = vmatmul.msk.f32.vlgmr.msra.gmra.mxu2 %vm76_vm0, %v58_v13 }
   0xd   :  { %352 = vmatpush.msrb.mxu2 %v25_v6  ;;  %406 = vmatpush.msrb.mxu3 %v25_v6 }
   0xe   :  { %246 = vmatpush.msrb.mxu0 %v23_v10  ;;  %119 = vmatpush.msra.mxu1 %v18_v19 }
   0xf   :  { %353 = vmatpush.msrb.mxu2 %v24_v7  ;;  %407 = vmatpush.msrb.mxu3 %v24_v7 }
  0x10   :  { %247 = vmatpush.msrb.mxu0 %v22_v12  ;;  %298 = vmatpush.msrb.mxu1 %v25_v6 }
  0x11   :  { %354 = vmatpush.msrb.mxu2 %v23_v10  ;;  %408 = vmatpush.msrb.mxu3 %v23_v10 }
  0x12   :  { %153 = vrot.lane.b32.xlu1 %v59_v20, %s1394_s22  ;;  %299 = vmatpush.msrb.mxu1 %v24_v7 }
  0x13   :  { %355 = vmatpush.msrb.mxu2 %v22_v12  ;;  %409 = vmatpush.msrb.mxu3 %v22_v12 }
  0x14   :  { %300 = vmatpush.msrb.mxu1 %v23_v10 }
  0x16   :  { %301 = vmatpush.msrb.mxu1 %v22_v12 }
  0x74   :  { %v72_v16 = vpop.permute.xlu0 %71 }
  0x75   :  { %vm73_vm1 = vcmp.eq.s32.totalorder %v1473_v15, %v72_v16 }
  0x76   :  { %v1253_v18 = vsel %vm73_vm1, 1.0, %v1393_v17 }
  0x77   :  { %1254 = vmatmul.msk.f32.vlgmr.msra.gmra.mxu0 %vm76_vm0, %v1253_v18 }
  0x78   :  { %460 = vmatpush.msra.mxu0 %v25_v6 }
  0x7a   :  { %461 = vmatpush.msra.mxu0 %v24_v7 }
  0x7c   :  { %462 = vmatpush.msra.mxu0 %v23_v10 }
  0x7e   :  { %463 = vmatpush.msra.mxu0 %v22_v12 }
  0x84   :  { %v154_v36 = vpop.permute.xlu1 %153 }
  0x8f   :  { %v144_v24 = vpop.f32.mrf.mxu2 }
  0xf4   :  { %v97_v21 = vpop.f32.mrf.mxu0 }
  0xf5   :  { %1255 = vmatmul.msk.f32.vlgmr.msra.gmra.mxu1 %vm76_vm0, %v97_v21 }
  0xf6   :  { %514 = vmatpush.msra.mxu1 %v25_v6 }
  0xf8   :  { %515 = vmatpush.msra.mxu1 %v24_v7 }
  0xfa   :  { %516 = vmatpush.msra.mxu1 %v23_v10 }
  0xfc   :  { %517 = vmatpush.msra.mxu1 %v22_v12 }
 0x172   :  { %v121_v23 = vpop.f32.mrf.mxu1 }
 0x173   :  { %v1491_v25 = vadd.f32 %v1293_v22, %v121_v23 }
 0x175   :  { %v147_v28 = vadd.f32 %v144_v24, %v1491_v25 }
 0x177   :  { %v148_v29 = vmul.f32 %v147_v28, %v1493_v27 }
 0x179   :  { %1296 = vtanh.f32 %v148_v29 }
 0x17f   :  { %v1297_v30 = vpop.eup %1296 }
 0x180   :  { %v150_v32 = vmul.f32 %v1297_v30, %v1493_v27 }
 0x182   :  { %v151_v33 = vadd.f32 %v150_v32, %v1497_v31 }
 0x184   :  { %158 = vrot.lane.b32.xlu0 %v151_v33, %s1396_s25  ;;  %v156_v37 = vmul.f32 %v154_v36, %v151_v33 }
 0x1f6   :  { %v159_v34 = vpop.permute.xlu0 %158 }
 0x1f7   :  { %v161_v35 = vmul.f32 %v159_v34, %v151_v33 }
 0x1f9   :  { %163 = vrot.lane.b32.xlu1 %v161_v35, %s1394_s22 }
 0x26b   :  { %v164_v38 = vpop.permute.xlu1 %163 }
 0x26c   :  { %v166_v39 = vadd.f32 %v164_v38, %v156_v37 }
 0x26e   :  { %1298 = vtanh.f32 %v166_v39  ;;  %v207_v53 = vrot.slane %v166_v39, 7 }
 0x274   :  { %v1299_v40 = vpop.eup %1298 }
 0x275   :  { %169 = vrot.lane.b32.xlu2 %v1299_v40, %s1396_s25 }
 0x2cf   :  { %v170_v41 = vpop.permute.xlu2 %169 }
 0x2d0   :  { %v172_v42 = vmul.f32 %v170_v41, %v151_v33 }
 0x2d2   :  { %174 = vrot.lane.b32.xlu2 %v172_v42, %s1394_s22 }
 0x32c   :  { %v175_v43 = vpop.permute.xlu2 %174 }
 0x32d   :  { %1257 = vmatmul.msk.f32.vlgmr.msra.gmra.mxu3 %vm76_vm0, %v175_v43 }
 0x3b0   :  { %v195_v44 = vpop.f32.mrf.mxu3 }
 0x3b1   :  { %v199_v45 = vrot.slane %v195_v44, 7 }
 0x3b3   :  { %v201_v46 = vadd.f32 %v199_v45, %v1491_v25 }
 0x3b5   :  { %v202_v47 = vmul.f32 %v201_v46, %v1493_v27 }
 0x3b7   :  { %1300 = vtanh.f32 %v202_v47 }
 0x3bd   :  { %v1301_v48 = vpop.eup %1300 }
 0x3be   :  { %v204_v49 = vmul.f32 %v1301_v48, %v1493_v27 }
 0x3c0   :  { %v205_v50 = vadd.f32 %v204_v49, %v1497_v31 }
 0x3c2   :  { %211 = vrot.lane.b32.xlu0 %v205_v50, %s1396_s25  ;;  %v209_v54 = vmul.f32 %v207_v53, %v205_v50 }
 0x434   :  { %v212_v51 = vpop.permute.xlu0 %211 }
 0x435   :  { %v214_v52 = vmul.f32 %v212_v51, %v205_v50 }
 0x437   :  { %216 = vrot.lane.b32.xlu1 %v214_v52, %s1394_s22 }
 0x4a9   :  { %v217_v55 = vpop.permute.xlu1 %216 }
 0x4aa   :  { %v219_v56 = vadd.f32 %v217_v55, %v209_v54 }
 0x4ac   :  { %1302 = vtanh.f32 %v219_v56  ;;  %v261_v8 = vrot.slane %v219_v56, 7 }
 0x4b2   :  { %v1303_v57 = vpop.eup %1302 }
 0x4b3   :  { %222 = vrot.lane.b32.xlu2 %v1303_v57, %s1396_s25 }
 0x50d   :  { %v223_v58 = vpop.permute.xlu2 %222 }
 0x50e   :  { %v225_v59 = vmul.f32 %v223_v58, %v205_v50 }
 0x510   :  { %v227_v60 = vrot.slane %v225_v59, 1 }
 0x512   :  { %228 = vrot.lane.b32.xlu0 %v227_v60, %s1394_s22 }
 0x584   :  { %v229_v61 = vpop.permute.xlu0 %228 }
 0x585   :  { %1258 = vmatmul.msk.f32.vlgmr.msrb.gmra.mxu0 %vm76_vm0, %v229_v61 }
 0x602   :  { %v249_v62 = vpop.f32.mrf.mxu0 }
 0x603   :  { %v253_v63 = vrot.slane %v249_v62, 6 }
 0x605   :  { %v255_v1 = vadd.f32 %v253_v63, %v1491_v25 }
 0x607   :  { %v256_v2 = vmul.f32 %v255_v1, %v1493_v27 }
 0x609   :  { %1304 = vtanh.f32 %v256_v2 }
 0x60f   :  { %v1305_v3 = vpop.eup %1304 }
 0x610   :  { %v258_v4 = vmul.f32 %v1305_v3, %v1493_v27 }
 0x612   :  { %v259_v5 = vadd.f32 %v258_v4, %v1497_v31 }
 0x614   :  { %265 = vrot.lane.b32.xlu1 %v259_v5, %s1396_s25  ;;  %v263_v9 = vmul.f32 %v261_v8, %v259_v5 }
 0x686   :  { %v266_v6 = vpop.permute.xlu1 %265 }
 0x687   :  { %v268_v7 = vmul.f32 %v266_v6, %v259_v5 }
 0x689   :  { %270 = vrot.lane.b32.xlu2 %v268_v7, %s1394_s22 }
 0x6e3   :  { %v271_v10 = vpop.permute.xlu2 %270 }
 0x6e4   :  { %v273_v11 = vadd.f32 %v271_v10, %v263_v9 }
 0x6e6   :  { %1306 = vtanh.f32 %v273_v11  ;;  %v315_v30 = vrot.slane %v273_v11, 7 }
 0x6ec   :  { %v1307_v12 = vpop.eup %1306 }
 0x6ed   :  { %276 = vrot.lane.b32.xlu0 %v1307_v12, %s1396_s25 }
 0x75f   :  { %v277_v13 = vpop.permute.xlu0 %276 }
 0x760   :  { %v279_v14 = vmul.f32 %v277_v13, %v259_v5 }
 0x762   :  { %v281_v16 = vrot.slane %v279_v14, 2 }
 0x764   :  { %282 = vrot.lane.b32.xlu1 %v281_v16, %s1394_s22 }
 0x7d6   :  { %v283_v18 = vpop.permute.xlu1 %282 }
 0x7d7   :  { %1259 = vmatmul.msk.f32.vlgmr.msrb.gmra.mxu1 %vm76_vm0, %v283_v18 }
 0x854   :  { %v303_v19 = vpop.f32.mrf.mxu1 }
 0x855   :  { %v307_v20 = vrot.slane %v303_v19, 5 }
 0x857   :  { %v309_v21 = vadd.f32 %v307_v20, %v1491_v25 }
 0x859   :  { %v310_v22 = vmul.f32 %v309_v21, %v1493_v27 }
 0x85b   :  { %1308 = vtanh.f32 %v310_v22 }
 0x861   :  { %v1309_v23 = vpop.eup %1308 }
 0x862   :  { %v312_v24 = vmul.f32 %v1309_v23, %v1493_v27 }
 0x864   :  { %v313_v26 = vadd.f32 %v312_v24, %v1497_v31 }
 0x866   :  { %319 = vrot.lane.b32.xlu2 %v313_v26, %s1396_s25  ;;  %v317_v32 = vmul.f32 %v315_v30, %v313_v26 }
 0x8c0   :  { %v320_v28 = vpop.permute.xlu2 %319 }
 0x8c1   :  { %v322_v29 = vmul.f32 %v320_v28, %v313_v26 }
 0x8c3   :  { %324 = vrot.lane.b32.xlu0 %v322_v29, %s1394_s22 }
 0x935   :  { %v325_v33 = vpop.permute.xlu0 %324 }
 0x936   :  { %v327_v34 = vadd.f32 %v325_v33, %v317_v32 }
 0x938   :  { %1310 = vtanh.f32 %v327_v34  ;;  %v369_v49 = vrot.slane %v327_v34, 7 }
 0x93e   :  { %v1311_v35 = vpop.eup %1310 }
 0x93f   :  { %330 = vrot.lane.b32.xlu1 %v1311_v35, %s1396_s25 }
 0x9b1   :  { %v331_v36 = vpop.permute.xlu1 %330 }
 0x9b2   :  { %v333_v37 = vmul.f32 %v331_v36, %v313_v26 }
 0x9b4   :  { %v335_v38 = vrot.slane %v333_v37, 3 }
 0x9b6   :  { %336 = vrot.lane.b32.xlu2 %v335_v38, %s1394_s22 }
 0xa10   :  { %v337_v39 = vpop.permute.xlu2 %336 }
 0xa11   :  { %1260 = vmatmul.msk.f32.vlgmr.msrb.gmra.mxu2 %vm76_vm0, %v337_v39 }
 0xa94   :  { %v357_v40 = vpop.f32.mrf.mxu2 }
 0xa95   :  { %v361_v41 = vrot.slane %v357_v40, 4 }
 0xa97   :  { %v363_v42 = vadd.f32 %v361_v41, %v1491_v25 }
 0xa99   :  { %v364_v43 = vmul.f32 %v363_v42, %v1493_v27 }
 0xa9b   :  { %1312 = vtanh.f32 %v364_v43 }
 0xaa1   :  { %v1313_v44 = vpop.eup %1312 }
 0xaa2   :  { %v366_v45 = vmul.f32 %v1313_v44, %v1493_v27 }
 0xaa4   :  { %v367_v46 = vadd.f32 %v366_v45, %v1497_v31 }
 0xaa6   :  { %373 = vrot.lane.b32.xlu0 %v367_v46, %s1396_s25  ;;  %v371_v50 = vmul.f32 %v369_v49, %v367_v46  ;;  %v47_v49 = vld [vmem:[%s1798_s1 + $0x58] sm:$0xff] }
 0xaa7   :  { %568 = vmatpush.msra.mxu2 %v47_v49 }
 0xb18   :  { %v374_v47 = vpop.permute.xlu0 %373 }
 0xb19   :  { %v376_v48 = vmul.f32 %v374_v47, %v367_v46 }
 0xb1b   :  { %378 = vrot.lane.b32.xlu1 %v376_v48, %s1394_s22 }
 0xb8d   :  { %v379_v51 = vpop.permute.xlu1 %378 }
 0xb8e   :  { %v381_v52 = vadd.f32 %v379_v51, %v371_v50  ;;  %v46_v50 = vld [vmem:[%s1798_s1 + $0x50] sm:$0xff]  ;;  %v45_v51 = vld [vmem:[%s1798_s1 + $0x48] sm:$0xff] }
 0xb8f   :  { %569 = vmatpush.msra.mxu2 %v46_v50 }
 0xb90   :  { %1314 = vtanh.f32 %v381_v52  ;;  %v423_v4 = vrot.slane %v381_v52, 7  ;;  %v44_v52 = vld [vmem:[%s1798_s1 + $0x40] sm:$0xff] }
 0xb91   :  { %570 = vmatpush.msra.mxu2 %v45_v51 }
 0xb93   :  { %571 = vmatpush.msra.mxu2 %v44_v52 }
 0xb96   :  { %v1315_v53 = vpop.eup %1314 }
 0xb97   :  { %384 = vrot.lane.b32.xlu2 %v1315_v53, %s1396_s25 }
 0xbf1   :  { %v385_v54 = vpop.permute.xlu2 %384 }
 0xbf2   :  { %v387_v55 = vmul.f32 %v385_v54, %v367_v46 }
 0xbf4   :  { %v389_v56 = vrot.slane %v387_v55, 4 }
 0xbf6   :  { %390 = vrot.lane.b32.xlu0 %v389_v56, %s1394_s22 }
 0xc68   :  { %v391_v57 = vpop.permute.xlu0 %390 }
 0xc69   :  { %1261 = vmatmul.msk.f32.vlgmr.msrb.gmra.mxu3 %vm76_vm0, %v391_v57  ;;  %v29_v57 = vld [vmem:[%s1799_s2 + $0x58] sm:$0xff] }
 0xc6a   :  { %664 = vmatpush.msrb.mxu1 %v29_v57 }
 0xcec   :  { %v411_v58 = vpop.f32.mrf.mxu3 }
 0xced   :  { %v415_v59 = vrot.slane %v411_v58, 3  ;;  %v28_v58 = vld [vmem:[%s1799_s2 + $0x50] sm:$0xff] }
 0xcee   :  { %665 = vmatpush.msrb.mxu1 %v28_v58 }
 0xcef   :  { %v417_v60 = vadd.f32 %v415_v59, %v1491_v25  ;;  %v40_v59 = vld [vmem:[%s1798_s1 + $0x20] sm:$0xff] }
 0xcf1   :  { %v418_v61 = vmul.f32 %v417_v60, %v1493_v27  ;;  %v27_v60 = vld [vmem:[%s1799_s2 + $0x48] sm:$0xff] }
 0xcf2   :  { %666 = vmatpush.msrb.mxu1 %v27_v60 }
 0xcf3   :  { %1316 = vtanh.f32 %v418_v61  ;;  %v54_v61 = vld [vmem:[%s1798_s1 + $0x90] sm:$0xff] }
 0xcf4   :  { %606 = vmatpush.msra.mxu3 %v54_v61 }
 0xcf9   :  { %v1317_v62 = vpop.eup %1316 }
 0xcfa   :  { %v420_v63 = vmul.f32 %v1317_v62, %v1493_v27  ;;  %v53_v62 = vld [vmem:[%s1798_s1 + $0x88] sm:$0xff] }
 0xcfb   :  { %629 = vmatpush.msrb.mxu0 %v53_v62 }
 0xcfc   :  { %v421_v1 = vadd.f32 %v420_v63, %v1497_v31  ;;  %v60_v63 = vld [vmem:[%s1798_s1 + $0x9d] sm:$0x1] }
 0xcfd   :  { %1265 = vmatmul.msk.f32.vlgmr.msra.gmra.mxu3 %vm587_vm5, %v60_v63 }
 0xcfe   :  { %427 = vrot.lane.b32.xlu1 %v421_v1, %s1396_s25  ;;  %v425_v5 = vmul.f32 %v423_v4, %v421_v1 }
 0xd70   :  { %v428_v2 = vpop.permute.xlu1 %427 }
 0xd71   :  { %v430_v3 = vmul.f32 %v428_v2, %v421_v1  ;;  %v636_v2 = vmax.f32 %v40_v59, 0.0 }
 0xd73   :  { %432 = vrot.lane.b32.xlu2 %v430_v3, %s1394_s22  ;;  %v41_v3 = vld [vmem:[%s1798_s1 + $0x28] sm:$0xff] }
 0xd74   :  { %v637_v4 = vmax.f32 %v41_v3, 0.0 }
 0xdcd   :  { %v433_v6 = vpop.permute.xlu2 %432 }
 0xdce   :  { %v435_v7 = vadd.f32 %v433_v6, %v425_v5  ;;  %v56_v5 = vld [vmem:[%s1798_s1 + $0x99] sm:$0x1]  ;;  %v42_v6 = vld [vmem:[%s1798_s1 + $0x30] sm:$0xff] }
 0xdd0   :  { %1318 = vtanh.f32 %v435_v7  ;;  %v477_v24 = vrot.slane %v435_v7, 7 }
 0xdd6   :  { %v1319_v8 = vpop.eup %1318 }
 0xdd7   :  { %438 = vrot.lane.b32.xlu0 %v1319_v8, %s1396_s25 }
 0xe49   :  { %v439_v9 = vpop.permute.xlu0 %438 }
 0xe4a   :  { %v441_v10 = vmul.f32 %v439_v9, %v421_v1  ;;  %v26_v1 = vld [vmem:[%s1799_s2 + $0x40] sm:$0xff]  ;;  %v638_v9 = vmax.f32 %v42_v6, 0.0 }
 0xe4b   :  { %667 = vmatpush.msrb.mxu1 %v26_v1 }
 0xe4c   :  { %v443_v11 = vrot.slane %v441_v10, 5 }
 0xe4e   :  { %444 = vrot.lane.b32.xlu1 %v443_v11, %s1394_s22 }
 0xec0   :  { %v445_v12 = vpop.permute.xlu1 %444 }
 0xec1   :  { %1262 = vmatmul.msk.f32.vlgmr.msra.gmra.mxu0 %vm76_vm0, %v445_v12  ;;  %v43_v12 = vld [vmem:[%s1798_s1 + $0x38] sm:$0xff] }
 0xf3e   :  { %v465_v13 = vpop.f32.mrf.mxu0 }
 0xf3f   :  { %v469_v14 = vrot.slane %v465_v13, 2  ;;  %v639_v13 = vmax.f32 %v43_v12, 0.0 }
 0xf41   :  { %v471_v16 = vadd.f32 %v469_v14, %v1491_v25 }
 0xf43   :  { %v472_v18 = vmul.f32 %v471_v16, %v1493_v27  ;;  %v52_v16 = vld [vmem:[%s1798_s1 + $0x80] sm:$0xff] }
 0xf44   :  { %630 = vmatpush.msrb.mxu0 %v52_v16 }
 0xf45   :  { %1320 = vtanh.f32 %v472_v18  ;;  %v1398_v18 = vmov 1  }
 0xf46   :  { %1291 = vset.pattern.permute.xlu2 %v1398_v18  ;;  %1292 = vset.pattern.permute.xlu0 %v1398_v18 }
 0xf4b   :  { %v1321_v19 = vpop.eup %1320 }
 0xf4c   :  { %v474_v20 = vmul.f32 %v1321_v19, %v1493_v27  ;;  %v1632_v19 = vld [vmem:[%s1799_s2 + $0x78] sm:$0xff] }
 0xf4d   :  { %727 = vmatpush.msrb.mxu3 %v1632_v19  ;;  %776 = vmatpush.msra.mxu0 %v1632_v19 }
 0xf4e   :  { %v475_v21 = vadd.f32 %v474_v20, %v1497_v31  ;;  %v1637_v20 = vld [vmem:[%s1799_s2 + $0x70] sm:$0xff] }
 0xf4f   :  { %728 = vmatpush.msrb.mxu3 %v1637_v20  ;;  %777 = vmatpush.msra.mxu0 %v1637_v20 }
 0xf50   :  { %481 = vrot.lane.b32.xlu2 %v475_v21, %s1396_s25  ;;  %v479_v26 = vmul.f32 %v477_v24, %v475_v21 }
 0xfaa   :  { %v482_v22 = vpop.permute.xlu2 %481 }
 0xfab   :  { %v484_v23 = vmul.f32 %v482_v22, %v475_v21  ;;  %v61_v22 = vld [vmem:[%s1798_s1 + $0x9e] sm:$0x1] }
 0xfad   :  { %486 = vrot.lane.b32.xlu0 %v484_v23, %s1394_s22 }
0x101f   :  { %v487_v28 = vpop.permute.xlu0 %486 }
0x1020   :  { %v489_v29 = vadd.f32 %v487_v28, %v479_v26 }
0x1022   :  { %1322 = vtanh.f32 %v489_v29  ;;  %v531_v45 = vrot.slane %v489_v29, 7 }
0x1028   :  { %v1323_v30 = vpop.eup %1322 }
0x1029   :  { %492 = vrot.lane.b32.xlu1 %v1323_v30, %s1396_s25 }
0x109b   :  { %v493_v32 = vpop.permute.xlu1 %492 }
0x109c   :  { %v495_v33 = vmul.f32 %v493_v32, %v475_v21  ;;  %v31_v32 = vld [vmem:[%s1799_s2 + $0x68] sm:$0xff] }
0x109d   :  { %729 = vmatpush.msrb.mxu3 %v31_v32  ;;  %778 = vmatpush.msra.mxu0 %v31_v32 }
0x109e   :  { %v497_v34 = vrot.slane %v495_v33, 6 }
0x10a0   :  { %498 = vrot.lane.b32.xlu2 %v497_v34, %s1394_s22  ;;  %v30_v34 = vld [vmem:[%s1799_s2 + $0x60] sm:$0xff] }
0x10a1   :  { %730 = vmatpush.msrb.mxu3 %v30_v34  ;;  %779 = vmatpush.msra.mxu0 %v30_v34 }
0x10a3   :  { %894 = vmatpush.msra.mxu3 %v1632_v19 }
0x10a5   :  { %895 = vmatpush.msra.mxu3 %v1637_v20 }
0x10a7   :  { %896 = vmatpush.msra.mxu3 %v31_v32 }
0x10a9   :  { %897 = vmatpush.msra.mxu3 %v30_v34 }
0x10fa   :  { %v499_v35 = vpop.permute.xlu2 %498 }
0x10fb   :  { %1263 = vmatmul.msk.f32.vlgmr.msra.gmra.mxu1 %vm76_vm0, %v499_v35  ;;  %v55_v35 = vld [vmem:[%s1798_s1 + $0x98] sm:$0x1] }
0x1103   :  { %1267 = vmatmul.msk.f32.vlgmr.msrb.gmra.mxu1 %vm76_vm0, %v636_v2 }
0x110b   :  { %1268 = vmatmul.msk.f32.gmra.mxu1 %vm76_vm0, %v637_v4 }
0x1113   :  { %1269 = vmatmul.msk.f32.gmra.mxu1 %vm76_vm0, %v638_v9 }
0x111b   :  { %1270 = vmatmul.msk.f32.gmra.mxu1 %vm76_vm0, %v639_v13 }
0x1178   :  { %v519_v36 = vpop.f32.mrf.mxu1 }
0x1179   :  { %v523_v37 = vrot.slane %v519_v36, 1 }
0x117b   :  { %v525_v38 = vadd.f32 %v523_v37, %v1491_v25 }
0x117d   :  { %v526_v39 = vmul.f32 %v525_v38, %v1493_v27 }
0x117f   :  { %1324 = vtanh.f32 %v526_v39  ;;  %v1294_v39 = vld [vmem:[%s1799_s2 + $0x81] ss:$0 sm:$0xff] }
0x1180   :  { %v669_v21 = vpop.f32.mrf.mxu1 }
0x1185   :  { %v1325_v40 = vpop.eup %1324 }
0x1186   :  { %v528_v41 = vmul.f32 %v1325_v40, %v1493_v27 }
0x1188   :  { %v529_v42 = vadd.f32 %v528_v41, %v1497_v31 }
0x118a   :  { %535 = vrot.lane.b32.xlu0 %v529_v42, %s1396_s25  ;;  %v533_v46 = vmul.f32 %v531_v45, %v529_v42 }
0x11fc   :  { %v536_v43 = vpop.permute.xlu0 %535 }
0x11fd   :  { %v538_v44 = vmul.f32 %v536_v43, %v529_v42 }
0x11ff   :  { %540 = vrot.lane.b32.xlu1 %v538_v44, %s1394_s22 }
0x1271   :  { %v541_v47 = vpop.permute.xlu1 %540 }
0x1272   :  { %v543_v48 = vadd.f32 %v541_v47, %v533_v46 }
0x1274   :  { %1326 = vtanh.f32 %v543_v48 }
0x127a   :  { %v1327_v25 = vpop.eup %1326 }
0x127b   :  { %546 = vrot.lane.b32.xlu2 %v1327_v25, %s1396_s25 }
0x1283   :  { %683 = vperm.xlu2 %1291, %v1433_v0   ;;  %v672_v0 = vpop.f32.mrf.mxu1 }
0x128b   :  { %v675_v28 = vpop.f32.mrf.mxu1 }
0x1293   :  { %v678_v29 = vpop.f32.mrf.mxu1 }
0x1294   :  { %704 = vmatpush.msrb.mxu2 %v678_v29 }
0x1296   :  { %705 = vmatpush.msrb.mxu2 %v675_v28 }
0x1298   :  { %706 = vmatpush.msrb.mxu2 %v672_v0 }
0x129a   :  { %707 = vmatpush.msrb.mxu2 %v669_v21 }
0x12d5   :  { %v547_v53 = vpop.permute.xlu2 %546 }
0x12d6   :  { %v549_v54 = vmul.f32 %v547_v53, %v529_v42 }
0x12d8   :  { %v551_v55 = vrot.slane %v549_v54, 7 }
0x12da   :  { %552 = vrot.lane.b32.xlu0 %v551_v55, %s1394_s22 }
0x12dd   :  { %v684_v30 = vpop.permute.xlu2 %683 }
0x12de   :  { %vm685_vm8 = vcmp.eq.s32.totalorder %v1473_v15, %v684_v30 }
0x12df   :  { %v1271_v33 = vsel %vm685_vm8, 1.0, %v1393_v17  ;;  %v608_v17 = vpop.f32.mrf.mxu3 }
0x134c   :  { %v553_v56 = vpop.permute.xlu0 %552 }
0x134d   :  { %1264 = vmatmul.msk.f32.vlgmr.msra.gmra.mxu2 %vm76_vm0, %v553_v56 }
0x134e   :  { %835 = vmatpush.msra.mxu2 %v1632_v19 }
0x1350   :  { %836 = vmatpush.msra.mxu2 %v1637_v20 }
0x1352   :  { %837 = vmatpush.msra.mxu2 %v31_v32 }
0x1354   :  { %838 = vmatpush.msra.mxu2 %v30_v34 }
0x1355   :  { %1272 = vmatmul.msk.f32.vlgmr.msrb.gmra.mxu2 %vm76_vm0, %v1271_v33 }
0x1356   :  { %1012 = vmatpush.msrb.mxu2 %v1632_v19 }
0x1358   :  { %1013 = vmatpush.msrb.mxu2 %v1637_v20 }
0x135a   :  { %1014 = vmatpush.msrb.mxu2 %v31_v32 }
0x135c   :  { %1015 = vmatpush.msrb.mxu2 %v30_v34 }
0x13d0   :  { %v573_v7 = vpop.f32.mrf.mxu2 }
0x13d1   :  { %v574_v8 = vadd.f32 %v573_v7, %v56_v5 }
0x13d3   :  { %v578_v10 = vmul.f32 0.5, %v574_v8  ;;  %577 = vst.msk [vmem:[%s1802_s5] sm:$0x1] %vm576_vm6, %v574_v8 }
0x13d5   :  { %v579_v11 = vmul.f32 1.442695, %v578_v10 }
0x13d7   :  { %1328 = vpow2.f32 %v579_v11 }
0x13d8   :  { %v709_v40 = vpop.f32.mrf.mxu2 }
0x13d9   :  { %v1672_v41 = vadd.f32 %v1294_v39, %v709_v40 }
0x13dd   :  { %v1329_v14 = vpop.eup %1328 }
0x13de   :  { %582 = vrot.lane.b32.xlu1 %v1329_v14, %s1397_s10 }
0x1450   :  { %v583_v23 = vpop.permute.xlu1 %582 }
0x1451   :  { %v585_v24 = vmul.f32 %v583_v23, %v61_v22 }
0x1453   :  { %v586_v26 = vadd.f32 %v585_v24, %v574_v8 }
0x1455   :  { %1266 = vmatmul.msk.f32.vlgmr.msrb.gmra.mxu0 %vm611_vm7, %v586_v26 }
0x1456   :  { %953 = vmatpush.msrb.mxu0 %v1632_v19 }
0x1458   :  { %954 = vmatpush.msrb.mxu0 %v1637_v20 }
0x145a   :  { %955 = vmatpush.msrb.mxu0 %v31_v32 }
0x145c   :  { %956 = vmatpush.msrb.mxu0 %v30_v34 }
0x14d2   :  { %v632_v36 = vpop.f32.mrf.mxu0 }
0x14d3   :  { %v633_v37 = vadd.f32 %v632_v36, %v608_v17 }
0x14d5   :  { %v635_v38 = vadd.f32 %v633_v37, %v55_v35 }
0x14d7   :  { %1273 = vmatmul.msk.f32.vlgmr.msrb.gmra.mxu3 %vm76_vm0, %v635_v38 }
0x14d8   :  { %1071 = vmatpush.msrb.mxu3 %v1632_v19 }
0x14da   :  { %1072 = vmatpush.msrb.mxu3 %v1637_v20 }
0x14dc   :  { %1073 = vmatpush.msrb.mxu3 %v31_v32 }
0x14de   :  { %1074 = vmatpush.msrb.mxu3 %v30_v34 }
0x155a   :  { %v732_v42 = vpop.f32.mrf.mxu3 }
0x155b   :  { %v735_v43 = vadd.f32 %v732_v42, %v1672_v41 }
0x155d   :  { %v736_v44 = vmul.f32 %v735_v43, %v1493_v27 }
0x155f   :  { %1330 = vtanh.f32 %v736_v44 }
0x1565   :  { %v1331_v45 = vpop.eup %1330 }
0x1566   :  { %v738_v46 = vmul.f32 %v1331_v45, %v1493_v27 }
0x1568   :  { %v739_v47 = vadd.f32 %v738_v46, %v1497_v31 }
0x156a   :  { %742 = vrot.lane.b32.xlu0 %v739_v47, %s1396_s25  ;;  %v740_v49 = vmul.f32 0.0, %v739_v47 }
0x15dc   :  { %v743_v48 = vpop.permute.xlu0 %742 }
0x15dd   :  { %v745_v25 = vmul.f32 %v743_v48, %v739_v47 }
0x15df   :  { %747 = vrot.lane.b32.xlu1 %v745_v25, %s1394_s22 }
0x1651   :  { %v748_v50 = vpop.permute.xlu1 %747 }
0x1652   :  { %v750_v51 = vadd.f32 %v748_v50, %v740_v49 }
0x1654   :  { %1332 = vtanh.f32 %v750_v51  ;;  %v793_v2 = vrot.slane %v750_v51, 7 }
0x165a   :  { %v1333_v52 = vpop.eup %1332 }
0x165b   :  { %753 = vrot.lane.b32.xlu2 %v1333_v52, %s1396_s25 }
0x16b5   :  { %v754_v53 = vpop.permute.xlu2 %753 }
0x16b6   :  { %v756_v54 = vmul.f32 %v754_v53, %v739_v47 }
0x16b8   :  { %758 = vrot.lane.b32.xlu0 %v756_v54, %s1394_s22 }
0x172a   :  { %v759_v55 = vpop.permute.xlu0 %758 }
0x172b   :  { %761 = vst.msk [vmem:[#allocation2] sm:$0x1] %vm576_vm6, %v759_v55  ;;  %1274 = vmatmul.msk.f32.vlgmr.msra.gmra.mxu0 %vm76_vm0, %v759_v55 }
0x172c   :  { %1130 = vmatpush.msra.mxu0 %v1632_v19 }
0x172e   :  { %1131 = vmatpush.msra.mxu0 %v1637_v20 }
0x1730   :  { %1132 = vmatpush.msra.mxu0 %v31_v32 }
0x1732   :  { %1133 = vmatpush.msra.mxu0 %v30_v34 }
0x17a8   :  { %v781_v56 = vpop.f32.mrf.mxu0 }
0x17a9   :  { %v785_v57 = vrot.slane %v781_v56, 7 }
0x17ab   :  { %v787_v58 = vadd.f32 %v785_v57, %v1672_v41 }
0x17ad   :  { %v788_v59 = vmul.f32 %v787_v58, %v1493_v27 }
0x17af   :  { %1334 = vtanh.f32 %v788_v59 }
0x17b5   :  { %v1335_v60 = vpop.eup %1334 }
0x17b6   :  { %v790_v61 = vmul.f32 %v1335_v60, %v1493_v27 }
0x17b8   :  { %v791_v62 = vadd.f32 %v790_v61, %v1497_v31 }
0x17ba   :  { %797 = vrot.lane.b32.xlu1 %v791_v62, %s1396_s25  ;;  %v795_v3 = vmul.f32 %v793_v2, %v791_v62 }
0x182c   :  { %v798_v63 = vpop.permute.xlu1 %797 }
0x182d   :  { %v800_v1 = vmul.f32 %v798_v63, %v791_v62 }
0x182f   :  { %802 = vrot.lane.b32.xlu2 %v800_v1, %s1394_s22 }
0x1889   :  { %v803_v4 = vpop.permute.xlu2 %802 }
0x188a   :  { %v805_v5 = vadd.f32 %v803_v4, %v795_v3 }
0x188c   :  { %1336 = vtanh.f32 %v805_v5  ;;  %v852_v0 = vrot.slane %v805_v5, 7 }
0x1892   :  { %v1337_v6 = vpop.eup %1336 }
0x1893   :  { %808 = vrot.lane.b32.xlu0 %v1337_v6, %s1396_s25 }
0x1905   :  { %v809_v7 = vpop.permute.xlu0 %808 }
0x1906   :  { %v1693_v8 = vmul.f32 %v809_v7, %v791_v62 }
0x1908   :  { %v818_v9 = vrot.slane %v1693_v8, 1 }
0x190a   :  { %819 = vrot.lane.b32.xlu1 %v818_v9, %s1394_s22 }
0x197c   :  { %v820_v10 = vpop.permute.xlu1 %819 }
0x197d   :  { %1275 = vmatmul.msk.f32.vlgmr.msra.gmra.mxu2 %vm76_vm0, %v820_v10 }
0x1a00   :  { %v840_v11 = vpop.f32.mrf.mxu2 }
0x1a01   :  { %v844_v12 = vrot.slane %v840_v11, 6 }
0x1a03   :  { %v846_v13 = vadd.f32 %v844_v12, %v1672_v41 }
0x1a05   :  { %v847_v14 = vmul.f32 %v846_v13, %v1493_v27 }
0x1a07   :  { %1338 = vtanh.f32 %v847_v14 }
0x1a0d   :  { %v1339_v16 = vpop.eup %1338 }
0x1a0e   :  { %v849_v18 = vmul.f32 %v1339_v16, %v1493_v27 }
0x1a10   :  { %v850_v19 = vadd.f32 %v849_v18, %v1497_v31 }
0x1a12   :  { %856 = vrot.lane.b32.xlu2 %v850_v19, %s1396_s25  ;;  %v854_v22 = vmul.f32 %v852_v0, %v850_v19 }
0x1a6c   :  { %v857_v20 = vpop.permute.xlu2 %856 }
0x1a6d   :  { %v859_v21 = vmul.f32 %v857_v20, %v850_v19 }
0x1a6f   :  { %861 = vrot.lane.b32.xlu0 %v859_v21, %s1394_s22 }
0x1ae1   :  { %v862_v23 = vpop.permute.xlu0 %861 }
0x1ae2   :  { %v864_v24 = vadd.f32 %v862_v23, %v854_v22 }
0x1ae4   :  { %1340 = vtanh.f32 %v864_v24  ;;  %v911_v42 = vrot.slane %v864_v24, 7 }
0x1aea   :  { %v1341_v26 = vpop.eup %1340 }
0x1aeb   :  { %867 = vrot.lane.b32.xlu1 %v1341_v26, %s1396_s25 }
0x1b5d   :  { %v868_v28 = vpop.permute.xlu1 %867 }
0x1b5e   :  { %v1705_v29 = vmul.f32 %v868_v28, %v850_v19 }
0x1b60   :  { %v877_v30 = vrot.slane %v1705_v29, 2 }
0x1b62   :  { %878 = vrot.lane.b32.xlu2 %v877_v30, %s1394_s22 }
0x1bbc   :  { %v879_v32 = vpop.permute.xlu2 %878 }
0x1bbd   :  { %1276 = vmatmul.msk.f32.vlgmr.msra.gmra.mxu3 %vm76_vm0, %v879_v32 }
0x1c40   :  { %v899_v33 = vpop.f32.mrf.mxu3 }
0x1c41   :  { %v903_v34 = vrot.slane %v899_v33, 5 }
0x1c43   :  { %v905_v17 = vadd.f32 %v903_v34, %v1672_v41 }
0x1c45   :  { %v906_v35 = vmul.f32 %v905_v17, %v1493_v27 }
0x1c47   :  { %1342 = vtanh.f32 %v906_v35 }
0x1c4d   :  { %v1343_v36 = vpop.eup %1342 }
0x1c4e   :  { %v908_v37 = vmul.f32 %v1343_v36, %v1493_v27 }
0x1c50   :  { %v909_v38 = vadd.f32 %v908_v37, %v1497_v31 }
0x1c52   :  { %915 = vrot.lane.b32.xlu0 %v909_v38, %s1396_s25  ;;  %v913_v43 = vmul.f32 %v911_v42, %v909_v38 }
0x1cc4   :  { %v916_v39 = vpop.permute.xlu0 %915 }
0x1cc5   :  { %v918_v40 = vmul.f32 %v916_v39, %v909_v38 }
0x1cc7   :  { %920 = vrot.lane.b32.xlu1 %v918_v40, %s1394_s22 }
0x1d39   :  { %v921_v44 = vpop.permute.xlu1 %920 }
0x1d3a   :  { %v923_v45 = vadd.f32 %v921_v44, %v913_v43 }
0x1d3c   :  { %1344 = vtanh.f32 %v923_v45  ;;  %v970_v59 = vrot.slane %v923_v45, 7 }
0x1d42   :  { %v1345_v46 = vpop.eup %1344 }
0x1d43   :  { %926 = vrot.lane.b32.xlu2 %v1345_v46, %s1396_s25 }
0x1d9d   :  { %v927_v47 = vpop.permute.xlu2 %926 }
0x1d9e   :  { %v1717_v48 = vmul.f32 %v927_v47, %v909_v38 }
0x1da0   :  { %v936_v25 = vrot.slane %v1717_v48, 3 }
0x1da2   :  { %937 = vrot.lane.b32.xlu0 %v936_v25, %s1394_s22 }
0x1e14   :  { %v938_v49 = vpop.permute.xlu0 %937 }
0x1e15   :  { %1277 = vmatmul.msk.f32.vlgmr.msrb.gmra.mxu0 %vm76_vm0, %v938_v49 }
0x1e92   :  { %v958_v50 = vpop.f32.mrf.mxu0 }
0x1e93   :  { %v962_v51 = vrot.slane %v958_v50, 4 }
0x1e95   :  { %v964_v52 = vadd.f32 %v962_v51, %v1672_v41 }
0x1e97   :  { %v965_v53 = vmul.f32 %v964_v52, %v1493_v27 }
0x1e99   :  { %1346 = vtanh.f32 %v965_v53 }
0x1e9f   :  { %v1347_v54 = vpop.eup %1346 }
0x1ea0   :  { %v967_v55 = vmul.f32 %v1347_v54, %v1493_v27 }
0x1ea2   :  { %v968_v56 = vadd.f32 %v967_v55, %v1497_v31 }
0x1ea4   :  { %974 = vrot.lane.b32.xlu1 %v968_v56, %s1396_s25  ;;  %v972_v60 = vmul.f32 %v970_v59, %v968_v56 }
0x1f16   :  { %v975_v57 = vpop.permute.xlu1 %974 }
0x1f17   :  { %v977_v58 = vmul.f32 %v975_v57, %v968_v56 }
0x1f19   :  { %979 = vrot.lane.b32.xlu2 %v977_v58, %s1394_s22 }
0x1f73   :  { %v980_v61 = vpop.permute.xlu2 %979 }
0x1f74   :  { %v982_v62 = vadd.f32 %v980_v61, %v972_v60 }
0x1f76   :  { %1348 = vtanh.f32 %v982_v62  ;;  %v1029_v16 = vrot.slane %v982_v62, 7 }
0x1f7c   :  { %v1349_v63 = vpop.eup %1348 }
0x1f7d   :  { %985 = vrot.lane.b32.xlu0 %v1349_v63, %s1396_s25 }
0x1fef   :  { %v986_v1 = vpop.permute.xlu0 %985 }
0x1ff0   :  { %v1729_v2 = vmul.f32 %v986_v1, %v968_v56  ;;  %v51_v1 = vld [vmem:[%s1798_s1 + $0x78] sm:$0xff] }
0x1ff1   :  { %1189 = vmatpush.msra.mxu2 %v51_v1 }
0x1ff2   :  { %v995_v3 = vrot.slane %v1729_v2, 4 }
0x1ff4   :  { %996 = vrot.lane.b32.xlu1 %v995_v3, %s1394_s22  ;;  %v48_v3 = vld [vmem:[%s1798_s1 + $0x60] sm:$0xff] }
0x2066   :  { %v997_v4 = vpop.permute.xlu1 %996 }
0x2067   :  { %1278 = vmatmul.msk.f32.vlgmr.msrb.gmra.mxu2 %vm76_vm0, %v997_v4 }
0x20ea   :  { %v1017_v5 = vpop.f32.mrf.mxu2 }
0x20eb   :  { %v1021_v6 = vrot.slane %v1017_v5, 3 }
0x20ed   :  { %v1023_v7 = vadd.f32 %v1021_v6, %v1672_v41  ;;  %v1295_v6 = vld [vmem:[%s1798_s1 + $0x9a] ss:$0 sm:$0xff] }
0x20ef   :  { %v1024_v9 = vmul.f32 %v1023_v7, %v1493_v27 }
0x20f1   :  { %1350 = vtanh.f32 %v1024_v9 }
0x20f7   :  { %v1351_v10 = vpop.eup %1350 }
0x20f8   :  { %v1026_v11 = vmul.f32 %v1351_v10, %v1493_v27 }
0x20fa   :  { %v1027_v12 = vadd.f32 %v1026_v11, %v1497_v31 }
0x20fc   :  { %1033 = vrot.lane.b32.xlu2 %v1027_v12, %s1396_s25  ;;  %v1031_v18 = vmul.f32 %v1029_v16, %v1027_v12 }
0x2156   :  { %v1034_v13 = vpop.permute.xlu2 %1033 }
0x2157   :  { %v1036_v14 = vmul.f32 %v1034_v13, %v1027_v12 }
0x2159   :  { %1038 = vrot.lane.b32.xlu0 %v1036_v14, %s1394_s22 }
0x21cb   :  { %v1039_v19 = vpop.permute.xlu0 %1038 }
0x21cc   :  { %v1041_v20 = vadd.f32 %v1039_v19, %v1031_v18 }
0x21ce   :  { %1352 = vtanh.f32 %v1041_v20  ;;  %v1088_v37 = vrot.slane %v1041_v20, 7 }
0x21d4   :  { %v1353_v21 = vpop.eup %1352 }
0x21d5   :  { %1044 = vrot.lane.b32.xlu1 %v1353_v21, %s1396_s25 }
0x2247   :  { %v1045_v0 = vpop.permute.xlu1 %1044 }
0x2248   :  { %v1047_v22 = vmul.f32 %v1045_v0, %v1027_v12 }
0x224a   :  { %v1054_v23 = vrot.slane %v1047_v22, 5 }
0x224c   :  { %1055 = vrot.lane.b32.xlu2 %v1054_v23, %s1394_s22 }
0x22a6   :  { %v1056_v24 = vpop.permute.xlu2 %1055 }
0x22a7   :  { %1279 = vmatmul.msk.f32.vlgmr.msrb.gmra.mxu3 %vm76_vm0, %v1056_v24 }
0x232a   :  { %v1076_v26 = vpop.f32.mrf.mxu3 }
0x232b   :  { %v1080_v28 = vrot.slane %v1076_v26, 2 }
0x232d   :  { %v1082_v30 = vadd.f32 %v1080_v28, %v1672_v41 }
0x232f   :  { %v1083_v32 = vmul.f32 %v1082_v30, %v1493_v27 }
0x2331   :  { %1354 = vtanh.f32 %v1083_v32 }
0x2337   :  { %v1355_v33 = vpop.eup %1354 }
0x2338   :  { %v1085_v34 = vmul.f32 %v1355_v33, %v1493_v27 }
0x233a   :  { %v1086_v17 = vadd.f32 %v1085_v34, %v1497_v31 }
0x233c   :  { %1092 = vrot.lane.b32.xlu0 %v1086_v17, %s1396_s25  ;;  %v1090_v38 = vmul.f32 %v1088_v37, %v1086_v17 }
0x23ae   :  { %v1093_v35 = vpop.permute.xlu0 %1092 }
0x23af   :  { %v1095_v36 = vmul.f32 %v1093_v35, %v1086_v17 }
0x23b1   :  { %1097 = vrot.lane.b32.xlu1 %v1095_v36, %s1394_s22 }
0x2423   :  { %v1098_v39 = vpop.permute.xlu1 %1097 }
0x2424   :  { %v1100_v40 = vadd.f32 %v1098_v39, %v1090_v38 }
0x2426   :  { %1356 = vtanh.f32 %v1100_v40 }
0x242c   :  { %v1357_v42 = vpop.eup %1356 }
0x242d   :  { %1103 = vrot.lane.b32.xlu2 %v1357_v42, %s1396_s25 }
0x2487   :  { %v1104_v43 = vpop.permute.xlu2 %1103 }
0x2488   :  { %v1106_v44 = vmul.f32 %v1104_v43, %v1086_v17 }
0x248a   :  { %v1113_v45 = vrot.slane %v1106_v44, 6 }
0x248c   :  { %1114 = vrot.lane.b32.xlu0 %v1113_v45, %s1394_s22 }
0x24fe   :  { %v1115_v46 = vpop.permute.xlu0 %1114 }
0x24ff   :  { %1280 = vmatmul.msk.f32.vlgmr.msra.gmra.mxu0 %vm76_vm0, %v1115_v46 }
0x257c   :  { %v1135_v47 = vpop.f32.mrf.mxu0 }
0x257d   :  { %v1139_v25 = vrot.slane %v1135_v47, 1 }
0x257f   :  { %v1141_v49 = vadd.f32 %v1139_v25, %v1672_v41 }
0x2581   :  { %v1142_v50 = vmul.f32 %v1141_v49, %v1493_v27 }
0x2583   :  { %1358 = vtanh.f32 %v1142_v50 }
0x2589   :  { %v1359_v51 = vpop.eup %1358 }
0x258a   :  { %v1144_v52 = vmul.f32 %v1359_v51, %v1493_v27 }
0x258c   :  { %v1145_v53 = vadd.f32 %v1144_v52, %v1497_v31  ;;  %v1147_v31 = vrot.slane %v1100_v40, 7 }
0x258e   :  { %1151 = vrot.lane.b32.xlu1 %v1145_v53, %s1396_s25 }
0x2596   :  { %813 = vrot.lane.b32.xlu1 %v1693_v8, %s1394_s22  ;;  %v1149_v8 = vmul.f32 %v1147_v31, %v1145_v53 }
0x259e   :  { %990 = vrot.lane.b32.xlu1 %v1729_v2, %s1394_s22  ;;  %v49_v2 = vld [vmem:[%s1798_s1 + $0x68] sm:$0xff] }
0x2600   :  { %v1152_v54 = vpop.permute.xlu1 %1151 }
0x2601   :  { %v1154_v55 = vmul.f32 %v1152_v54, %v1145_v53 }
0x2603   :  { %1156 = vrot.lane.b32.xlu2 %v1154_v55, %s1394_s22 }
0x2608   :  { %v814_v41 = vpop.permute.xlu1 %813 }
0x2609   :  { %817 = vst.msk [vmem:[#allocation2] sm:$0x2] %vm816_vm9, %v814_v41 }
0x260b   :  { %872 = vrot.lane.b32.xlu2 %v1705_v29, %s1394_s22 }
0x2610   :  { %v991_v27 = vpop.permute.xlu1 %990 }
0x2611   :  { %994 = vst.msk [vmem:[#allocation2] sm:$0x10] %vm993_vm10, %v991_v27 }
0x2613   :  { %1049 = vrot.lane.b32.xlu2 %v1047_v22, %s1394_s22 }
0x265d   :  { %v1157_v56 = vpop.permute.xlu2 %1156 }
0x265e   :  { %v1159_v57 = vadd.f32 %v1157_v56, %v1149_v8 }
0x2660   :  { %1360 = vtanh.f32 %v1159_v57 }
0x2665   :  { %v873_v58 = vpop.permute.xlu2 %872 }
0x2666   :  { %v1361_v59 = vpop.eup %1360  ;;  %876 = vst.msk [vmem:[#allocation2] sm:$0x4] %vm875_vm11, %v873_v58 }
0x2667   :  { %1162 = vrot.lane.b32.xlu0 %v1361_v59, %s1396_s25 }
0x266d   :  { %v1050_v60 = vpop.permute.xlu2 %1049 }
0x266e   :  { %1053 = vst.msk [vmem:[#allocation2] sm:$0x20] %vm1052_vm12, %v1050_v60 }
0x266f   :  { %931 = vrot.lane.b32.xlu0 %v1717_v48, %s1394_s22  ;;  %v50_v48 = vld [vmem:[%s1798_s1 + $0x70] sm:$0xff]  ;;  %s1399_s1 = smov [#allocation4]  }
0x2670   :  { %1190 = vmatpush.msra.mxu2 %v50_v48  ;;  %s1236_s9 = sshll.u32 %s1399_s1, 4  ;;  %s1237_s9 = int_to_ptr.vmem [resolvable:$true] %s1236_s9 }
0x2672   :  { %1191 = vmatpush.msra.mxu2 %v49_v2 }
0x2674   :  { %1192 = vmatpush.msra.mxu2 %v48_v3 }
0x2677   :  { %1108 = vrot.lane.b32.xlu0 %v1106_v44, %s1394_s22 }
0x26d9   :  { %v1163_v29 = vpop.permute.xlu0 %1162 }
0x26da   :  { %v1165_v61 = vmul.f32 %v1163_v29, %v1145_v53 }
0x26dc   :  { %1167 = vrot.lane.b32.xlu1 %v1165_v61, %s1394_s22 }
0x26e1   :  { %v932_v62 = vpop.permute.xlu0 %931 }
0x26e2   :  { %935 = vst.msk [vmem:[#allocation2] sm:$0x8] %vm934_vm13, %v932_v62 }
0x26e9   :  { %v1109_v63 = vpop.permute.xlu0 %1108 }
0x26ea   :  { %1112 = vst.msk [vmem:[#allocation2] sm:$0x40] %vm1111_vm14, %v1109_v63 }
0x274e   :  { %v1168_v4 = vpop.permute.xlu1 %1167 }
0x274f   :  { %1171 = vst.msk [vmem:[#allocation2] sm:$0x80] %vm1170_vm15, %v1168_v4 }
0x2756   :  { %v1172_v5 = vld [vmem:[#allocation2] sm:$0xff] }
0x2757   :  { %1281 = vmatmul.msk.f32.vlgmr.msra.gmra.mxu2 %vm76_vm0, %v1172_v5 }
0x27da   :  { %v1194_v7 = vpop.f32.mrf.mxu2 }
0x27db   :  { %v1195_v9 = vadd.f32 %v1295_v6, %v1194_v7 }
0x27dd   :  { %v1197_v10 = vsel %vm76_vm0, %v1195_v9, -inf }
0x27de   :  { %1198 = vmax.xlane.f32.xlu2 %v1197_v10 }
0x2851   :  { %v1199_v11 = vpop.xlane.xlu2 %1198 }
0x2852   :  { %v1200_v12 = vsub.f32 %v1195_v9, %v1199_v11  ;;  %vm1210_vm1 = vcmp.eq.f32.partialorder %v1195_v9, %v1199_v11 }
0x2853   :  { %v1211_v13 = vsel %vm1210_vm1, %v1473_v15, 32 }
0x2854   :  { %v1201_v14 = vmul.f32 1.442695, %v1200_v12  ;;  %v1212_v16 = vsel %vm76_vm0, %v1211_v13, 2147483647 }
0x2855   :  { %v1214_v18 = vshra.s32 %v1212_v16, 16  ;;  %v1213_v0 = vand.u32 65535, %v1212_v16 }
0x2856   :  { %1362 = vpow2.f32 %v1201_v14 }
0x2857   :  { %v1216_v19 = vcvt.s32.f32 %v1214_v18  ;;  %v1215_v23 = vcvt.s32.f32 %v1213_v0 }
0x2859   :  { %1217 = vmin.xlane.f32.xlu0 %v1216_v19 }
0x285c   :  { %v1363_v20 = vpop.eup %1362 }
0x285d   :  { %v1203_v21 = vsel %vm76_vm0, %v1363_v20, 0.0 }
0x285e   :  { %1204 = vadd.xlane.f32.xlu1 %v1203_v21 }
0x28cc   :  { %v1218_v22 = vpop.xlane.xlu0 %1217 }
0x28cd   :  { %vm1219_vm2 = vcmp.eq.f32.partialorder %v1216_v19, %v1218_v22  ;;  %v1224_v32 = vcvt.f32.s32 %v1218_v22 }
0x28ce   :  { %v1220_v24 = vsel %vm1219_vm2, %v1215_v23, inf }
0x28cf   :  { %1221 = vmin.xlane.f32.xlu2 %v1220_v24  ;;  %v1225_v34 = vshll.u32 %v1224_v32, 16 }
0x28d1   :  { %v1205_v26 = vpop.xlane.xlu1 %1204 }
0x28d2   :  { %1364 = vlog2.f32 %v1205_v26 }
0x28d8   :  { %v1365_v15 = vpop.eup %1364 }
0x28d9   :  { %v1207_v28 = vmul.f32 0.6931472, %v1365_v15 }
0x28db   :  { %v1208_v30 = vsub.f32 %v1200_v12, %v1207_v28 }
0x28dd   :  { %1209 = vst.msk [vmem:[#allocation4] sm:$0xff] %vm76_vm0, %v1208_v30 }
0x28de   :  { %1241 = dma.vmem_to_hbm [thread:$0]  %s1237_s9, 128, %s1239_s12, [#allocation5]  }
0x2942   :  { %v1222_v33 = vpop.xlane.xlu2 %1221 }
0x2943   :  { %v1223_v17 = vcvt.f32.s32 %v1222_v33 }
0x2945   :  { %v1226_v35 = vadd.s32 %v1225_v34, %v1223_v17 }
0x2947   :  { %1228 = vst.msk [vmem:[%s1800_s3] sm:$0xff] %vm1227_vm3, %v1226_v35 }
0x2948   :  { %1390 = dma.done.wait [#allocation5], 128  }
0x2949   :  { %1391 = vsyncadd [#allocation5], 4294967168 }
0x294a   :  { %1252 = vsyncpa [#allocation5], 1 }

</bundles_post_ra>
